<compile_context>
chip_gen: v5e
topology: v5e:2x2
jax: 0.10.0
libtpu: 0.0.40
codegen_flags: <defaults>
</compile_context>

<pallas_src>
import functools
import math

import jax
import jax.numpy as jnp
from jax.experimental import pallas as pl
from jax.experimental.pallas import tpu as pltpu


# ----------------------------------------------------------------------------
# In-kernel building blocks (operate on VMEM-resident *values*)
# ----------------------------------------------------------------------------

def _layernorm(z, g, b, eps):
    mean = jnp.mean(z, axis=-1, keepdims=True)
    var = jnp.mean((z - mean) ** 2, axis=-1, keepdims=True)
    return (z - mean) * jax.lax.rsqrt(var + eps) * g + b


def _circular_taps(x):
    """[x(t-1), x(t), x(t+1)] along the sequence (sublane) axis, circular wrap."""
    # TODO(synk): use pltpu.roll (XLU slot) at real sizes; slice+concat is the
    # maximally-robust lowering and equally free at these tiny shapes.
    return jnp.concatenate(
        [jnp.roll(x, 1, axis=0), x, jnp.roll(x, -1, axis=0)], axis=-1)


def _encoder_layer(x, prm, n_heads, eps):
    """Informer EncoderLayer: full softmax self-attention + 1x1-conv FFN (ReLU)."""
    (wqkv, bqkv, wo, bo, ln1g, ln1b, wf1, bf1, wf2, bf2, ln2g, ln2b) = prm
    L, D = x.shape
    E = D // n_heads
    scale = 1.0 / math.sqrt(E)

    # Fused QKV projection: one (L, D) @ (D, 3D) matmul + bias.
    qkv = jnp.dot(x, wqkv, preferred_element_type=jnp.float32) + bqkv

    # Heads -> leading batch dim; attention = two *batched* MXU contractions
    # instead of 3*H tiny per-head matmuls.
    qh = jnp.stack([qkv[:, h * E:(h + 1) * E] for h in range(n_heads)], axis=0)
    kh = jnp.stack([qkv[:, D + h * E:D + (h + 1) * E] for h in range(n_heads)], axis=0)
    vh = jnp.stack([qkv[:, 2 * D + h * E:2 * D + (h + 1) * E] for h in range(n_heads)], axis=0)

    s = jnp.einsum('hqe,hke->hqk', qh, kh,
                   preferred_element_type=jnp.float32) * scale          # (H, L, L)
    s = s - jnp.max(s, axis=-1, keepdims=True)
    p = jnp.exp(s)
    inv = pl.reciprocal(jnp.sum(p, axis=-1, keepdims=True), approx=True)
    oh = jnp.einsum('hqk,hke->hqe', p * inv, vh,
                    preferred_element_type=jnp.float32)                  # (H, L, E)
    attn = jnp.concatenate([oh[h] for h in range(n_heads)], axis=-1)     # (L, D)
    attn = jnp.dot(attn, wo, preferred_element_type=jnp.float32) + bo

    # Residual + LN1, FFN (ReLU), Residual + LN2.
    x1 = _layernorm(x + attn, ln1g, ln1b, eps)
    hmid = jnp.maximum(
        jnp.dot(x1, wf1, preferred_element_type=jnp.float32) + bf1, 0.0)
    y = jnp.dot(hmid, wf2, preferred_element_type=jnp.float32) + bf2
    return _layernorm(x1 + y, ln2g, ln2b, eps)


def _conv_distill(x, prm):
    """ConvLayer: circular k=3 conv -> BatchNorm(eval, folded) -> ELU -> MaxPool1d(3,2,1)."""
    w_conv, b_conv, bn_scale, bn_shift = prm
    L, D = x.shape
    y = jnp.dot(_circular_taps(x), w_conv, preferred_element_type=jnp.float32) + b_conv
    y = y * bn_scale + bn_shift
    y = jnp.where(y > 0, y, jnp.exp(jnp.minimum(y, 0.0)) - 1.0)          # ELU(alpha=1)

    # MaxPool1d(kernel=3, stride=2, padding=1): out[i] = max(y[2i-1], y[2i], y[2i+1])
    # with -inf borders; computed as a sliding 3-max then even-row subsample.
    L_out = (L + 2 - 3) // 2 + 1
    neg = jnp.full((1, D), -jnp.inf, y.dtype)
    y_prev = jnp.concatenate([neg, y[:-1]], axis=0)
    y_next = jnp.concatenate([y[1:], neg], axis=0)
    m3 = jnp.maximum(jnp.maximum(y_prev, y), y_next)                     # (L, D)
    return jnp.concatenate([m3[2 * i:2 * i + 1] for i in range(L_out)], axis=0)


# ----------------------------------------------------------------------------
# The single fused Pallas kernel (grid = (B,), parallel over batch)
# ----------------------------------------------------------------------------

def _informer_fused_kernel(*refs, n_heads, e_layers, n_convs, eps):
    it = iter(refs)
    x_ref = next(it)          # (1, L, enc_in)
    mark_ref = next(it)       # (1, L, n_mark)
    emb_w_ref = next(it)      # (3*enc_in + n_mark, D)
    pe_ref = next(it)         # (L, D)
    enc_prms = [tuple(next(it)[...] for _ in range(12)) for _ in range(e_layers)]
    conv_prms = [tuple(next(it)[...] for _ in range(4)) for _ in range(n_convs)]
    norm_g = next(it)[...]
    norm_b = next(it)[...]
    o_ref = next(it)          # (1, L_out, D)

    x = x_ref[0]              # (L, enc_in)
    mark = mark_ref[0]        # (L, n_mark)

    # DataEmbedding: [token circular-conv taps | timeF marks] @ W + positional enc.
    # (dropout = identity in eval)
    xc = jnp.concatenate(
        [jnp.roll(x, 1, axis=0), x, jnp.roll(x, -1, axis=0), mark], axis=-1)
    h = jnp.dot(xc, emb_w_ref[...], preferred_element_type=jnp.float32) + pe_ref[...]

    # Encoder: attn/conv interleave (distilling), final attn layer handled by loop.
    for i in range(e_layers):
        h = _encoder_layer(h, enc_prms[i], n_heads, eps)
        if i < n_convs:
            h = _conv_distill(h, conv_prms[i])

    # Final LayerNorm; only HBM traffic of the whole network is this store.
    o_ref[0] = _layernorm(h, norm_g, norm_b, eps).astype(o_ref.dtype)


# ----------------------------------------------------------------------------
# pallas_call wrapper
# ----------------------------------------------------------------------------

_ENC_KEYS = ("wqkv", "bqkv", "wo", "bo", "ln1_g", "ln1_b",
             "w_ff1", "b_ff1", "w_ff2", "b_ff2", "ln2_g", "ln2_b")
_CONV_KEYS = ("w_conv", "b_conv", "bn_scale", "bn_shift")


def _rep_spec(shape):
    nd = len(shape)
    return pl.BlockSpec(shape, lambda b, _nd=nd: (0,) * _nd)


def informer_encoder_forward(x_enc, x_mark_enc, params, cfg):
    B, L, enc_in = x_enc.shape
    n_mark = x_mark_enc.shape[-1]
    D = cfg["d_model"]
    H = cfg["n_heads"]
    e_layers = cfg["e_layers"]
    n_convs = (e_layers - 1) if cfg.get("distil", True) else 0

    L_out = L
    for _ in range(n_convs):
        L_out = (L_out + 2 - 3) // 2 + 1

    args = [x_enc, x_mark_enc, params["emb_w"], params["pe"]]
    for lp in params["enc_layers"]:
        args += [lp[k] for k in _ENC_KEYS]
    for cp in params["conv_layers"][:n_convs]:
        args += [cp[k] for k in _CONV_KEYS]
    args += [params["norm_g"], params["norm_b"]]

    in_specs = [
        pl.BlockSpec((1, L, enc_in), lambda b: (b, 0, 0)),
        pl.BlockSpec((1, L, n_mark), lambda b: (b, 0, 0)),
    ] + [_rep_spec(a.shape) for a in args[2:]]

    kern = functools.partial(_informer_fused_kernel, n_heads=H,
                             e_layers=e_layers, n_convs=n_convs, eps=1e-5)

    return pl.pallas_call(
        kern,
        grid=(B,),
        in_specs=in_specs,
        out_specs=pl.BlockSpec((1, L_out, D), lambda b: (b, 0, 0)),
        out_shape=jax.ShapeDtypeStruct((B, L_out, D), jnp.float32),
        compiler_params=pltpu.CompilerParams(dimension_semantics=("parallel",)),
    )(*args)


# ----------------------------------------------------------------------------
# Deterministic parameter init (fresh model; LN/BN at PyTorch defaults)
# ----------------------------------------------------------------------------

def positional_encoding(L, D):
    assert D % 2 == 0, "sinusoidal positional encoding assumes even d_model"
    position = jnp.arange(L, dtype=jnp.float32)[:, None]
    div_term = jnp.exp(jnp.arange(0, D, 2, dtype=jnp.float32) * -(math.log(10000.0) / D))
    pe = jnp.zeros((L, D), jnp.float32)
    pe = pe.at[:, 0::2].set(jnp.sin(position * div_term))
    pe = pe.at[:, 1::2].set(jnp.cos(position * div_term))
    return pe


def init_params(key, cfg, max_len, bn_eps=1e-5):
    D, d_ff = cfg["d_model"], cfg["d_ff"]
    enc_in, e_layers = cfg["enc_in"], cfg["e_layers"]
    n_mark = 4  # embed='timeF', freq='h' -> 4 time features

    def dense(k, fi, fo):
        return jax.random.normal(k, (fi, fo), jnp.float32) / math.sqrt(fi)

    n_keys = 1 + 4 * e_layers + (e_layers - 1)
    keys = iter(jax.random.split(key, n_keys))

    params = {
        # [token-conv taps (3*enc_in) ; timeF linear (n_mark)] -> D, no bias.
        "emb_w": dense(next(keys), 3 * enc_in + n_mark, D),
        "pe": positional_encoding(max_len, D),           # precomputed once
        "norm_g": jnp.ones((1, D), jnp.float32),
        "norm_b": jnp.zeros((1, D), jnp.float32),
    }

    enc_layers = []
    for _ in range(e_layers):
        enc_layers.append({
            # NOTE: when loading real weights, pack separate q/k/v Linear weights
            # (and their biases) into wqkv/bqkv in exactly this column order.
            "wqkv": dense(next(keys), D, 3 * D), "bqkv": jnp.zeros((1, 3 * D), jnp.float32),
            "wo": dense(next(keys), D, D), "bo": jnp.zeros((1, D), jnp.float32),
            "ln1_g": jnp.ones((1, D), jnp.float32), "ln1_b": jnp.zeros((1, D), jnp.float32),
            "w_ff1": dense(next(keys), D, d_ff), "b_ff1": jnp.zeros((1, d_ff), jnp.float32),
            "w_ff2": dense(next(keys), d_ff, D), "b_ff2": jnp.zeros((1, D), jnp.float32),
            "ln2_g": jnp.ones((1, D), jnp.float32), "ln2_b": jnp.zeros((1, D), jnp.float32),
        })
    params["enc_layers"] = enc_layers

    conv_layers = []
    for _ in range(e_layers - 1):
        # BatchNorm1d(eval) affine folded once at init: y*g/sqrt(rv+eps) + (b - rm*g/sqrt(rv+eps))
        bn_g = jnp.ones((1, D), jnp.float32)
        bn_b = jnp.zeros((1, D), jnp.float32)
        bn_rm = jnp.zeros((1, D), jnp.float32)
        bn_rv = jnp.ones((1, D), jnp.float32)
        bn_scale = bn_g / jnp.sqrt(bn_rv + bn_eps)
        conv_layers.append({
            "w_conv": dense(next(keys), 3 * D, D),
            "b_conv": jnp.zeros((1, D), jnp.float32),
            "bn_scale": bn_scale,
            "bn_shift": bn_b - bn_rm * bn_scale,
        })
    params["conv_layers"] = conv_layers
    return params


# ----------------------------------------------------------------------------
# Main
# ----------------------------------------------------------------------------

if __name__ == "__main__":
    cfg = dict(
        enc_in=4,        # input channels
        d_model=32,
        n_heads=4,
        d_ff=64,
        e_layers=2,      # 2 encoder layers -> 1 distilling ConvLayer
        distil=True,
        activation="relu",
        embed="timeF",   # freq='h' -> 4 time features
    )
    B, L = 2, 16

    key = jax.random.PRNGKey(0)
    k_x, k_m, k_p = jax.random.split(key, 3)
    x_enc = jax.random.normal(k_x, (B, L, cfg["enc_in"]), jnp.float32)
    x_mark_enc = jax.random.normal(k_m, (B, L, 4), jnp.float32)
    # x_dec / x_mark_dec are accepted by Model.forward but unused (encoder-only return).

    params = init_params(k_p, cfg, max_len=L)

    fwd = jax.jit(functools.partial(informer_encoder_forward, cfg=cfg))
    enc_out = jax.block_until_ready(fwd(x_enc, x_mark_enc, params))

    expected_len = (L + 2 - 3) // 2 + 1  # one distilling ConvLayer halves the sequence
    assert enc_out.shape == (B, expected_len, cfg["d_model"]), enc_out.shape
    assert bool(jnp.all(jnp.isfinite(enc_out)))
    print("KERNEL_OK")
</pallas_src>

<mosaic_0001>
module attributes {stable_mosaic.version = 11 : i64} {
  func.func @_informer_fused_kernel(%arg0: i32, %arg1: memref<1x16x4xf32, #tpu.memory_space<vmem>>, %arg2: memref<1x16x4xf32, #tpu.memory_space<vmem>>, %arg3: memref<16x32xf32, #tpu.memory_space<vmem>>, %arg4: memref<16x32xf32, #tpu.memory_space<vmem>>, %arg5: memref<32x96xf32, #tpu.memory_space<vmem>>, %arg6: memref<1x96xf32, #tpu.memory_space<vmem>>, %arg7: memref<32x32xf32, #tpu.memory_space<vmem>>, %arg8: memref<1x32xf32, #tpu.memory_space<vmem>>, %arg9: memref<1x32xf32, #tpu.memory_space<vmem>>, %arg10: memref<1x32xf32, #tpu.memory_space<vmem>>, %arg11: memref<32x64xf32, #tpu.memory_space<vmem>>, %arg12: memref<1x64xf32, #tpu.memory_space<vmem>>, %arg13: memref<64x32xf32, #tpu.memory_space<vmem>>, %arg14: memref<1x32xf32, #tpu.memory_space<vmem>>, %arg15: memref<1x32xf32, #tpu.memory_space<vmem>>, %arg16: memref<1x32xf32, #tpu.memory_space<vmem>>, %arg17: memref<32x96xf32, #tpu.memory_space<vmem>>, %arg18: memref<1x96xf32, #tpu.memory_space<vmem>>, %arg19: memref<32x32xf32, #tpu.memory_space<vmem>>, %arg20: memref<1x32xf32, #tpu.memory_space<vmem>>, %arg21: memref<1x32xf32, #tpu.memory_space<vmem>>, %arg22: memref<1x32xf32, #tpu.memory_space<vmem>>, %arg23: memref<32x64xf32, #tpu.memory_space<vmem>>, %arg24: memref<1x64xf32, #tpu.memory_space<vmem>>, %arg25: memref<64x32xf32, #tpu.memory_space<vmem>>, %arg26: memref<1x32xf32, #tpu.memory_space<vmem>>, %arg27: memref<1x32xf32, #tpu.memory_space<vmem>>, %arg28: memref<1x32xf32, #tpu.memory_space<vmem>>, %arg29: memref<96x32xf32, #tpu.memory_space<vmem>>, %arg30: memref<1x32xf32, #tpu.memory_space<vmem>>, %arg31: memref<1x32xf32, #tpu.memory_space<vmem>>, %arg32: memref<1x32xf32, #tpu.memory_space<vmem>>, %arg33: memref<1x32xf32, #tpu.memory_space<vmem>>, %arg34: memref<1x32xf32, #tpu.memory_space<vmem>>, %arg35: memref<1x8x32xf32, #tpu.memory_space<vmem>>) attributes {dimension_semantics = [#tpu.dimension_semantics<parallel>], iteration_bounds = array<i64: 2>, scalar_prefetch = 0 : i64, scratch_operands = 0 : i64, tpu.core_type = #tpu.core_type<tc>, window_params = [{transform_indices = @transform_0, window_bounds = array<i64: 1, 16, 4>}, {transform_indices = @transform_1, window_bounds = array<i64: 1, 16, 4>}, {pipeline_mode = #tpu.pipeline_mode<synchronous>, transform_indices = @transform_2, window_bounds = array<i64: 16, 32>}, {pipeline_mode = #tpu.pipeline_mode<synchronous>, transform_indices = @transform_3, window_bounds = array<i64: 16, 32>}, {pipeline_mode = #tpu.pipeline_mode<synchronous>, transform_indices = @transform_4, window_bounds = array<i64: 32, 96>}, {pipeline_mode = #tpu.pipeline_mode<synchronous>, transform_indices = @transform_5, window_bounds = array<i64: 1, 96>}, {pipeline_mode = #tpu.pipeline_mode<synchronous>, transform_indices = @transform_6, window_bounds = array<i64: 32, 32>}, {pipeline_mode = #tpu.pipeline_mode<synchronous>, transform_indices = @transform_7, window_bounds = array<i64: 1, 32>}, {pipeline_mode = #tpu.pipeline_mode<synchronous>, transform_indices = @transform_8, window_bounds = array<i64: 1, 32>}, {pipeline_mode = #tpu.pipeline_mode<synchronous>, transform_indices = @transform_9, window_bounds = array<i64: 1, 32>}, {pipeline_mode = #tpu.pipeline_mode<synchronous>, transform_indices = @transform_10, window_bounds = array<i64: 32, 64>}, {pipeline_mode = #tpu.pipeline_mode<synchronous>, transform_indices = @transform_11, window_bounds = array<i64: 1, 64>}, {pipeline_mode = #tpu.pipeline_mode<synchronous>, transform_indices = @transform_12, window_bounds = array<i64: 64, 32>}, {pipeline_mode = #tpu.pipeline_mode<synchronous>, transform_indices = @transform_13, window_bounds = array<i64: 1, 32>}, {pipeline_mode = #tpu.pipeline_mode<synchronous>, transform_indices = @transform_14, window_bounds = array<i64: 1, 32>}, {pipeline_mode = #tpu.pipeline_mode<synchronous>, transform_indices = @transform_15, window_bounds = array<i64: 1, 32>}, {pipeline_mode = #tpu.pipeline_mode<synchronous>, transform_indices = @transform_16, window_bounds = array<i64: 32, 96>}, {pipeline_mode = #tpu.pipeline_mode<synchronous>, transform_indices = @transform_17, window_bounds = array<i64: 1, 96>}, {pipeline_mode = #tpu.pipeline_mode<synchronous>, transform_indices = @transform_18, window_bounds = array<i64: 32, 32>}, {pipeline_mode = #tpu.pipeline_mode<synchronous>, transform_indices = @transform_19, window_bounds = array<i64: 1, 32>}, {pipeline_mode = #tpu.pipeline_mode<synchronous>, transform_indices = @transform_20, window_bounds = array<i64: 1, 32>}, {pipeline_mode = #tpu.pipeline_mode<synchronous>, transform_indices = @transform_21, window_bounds = array<i64: 1, 32>}, {pipeline_mode = #tpu.pipeline_mode<synchronous>, transform_indices = @transform_22, window_bounds = array<i64: 32, 64>}, {pipeline_mode = #tpu.pipeline_mode<synchronous>, transform_indices = @transform_23, window_bounds = array<i64: 1, 64>}, {pipeline_mode = #tpu.pipeline_mode<synchronous>, transform_indices = @transform_24, window_bounds = array<i64: 64, 32>}, {pipeline_mode = #tpu.pipeline_mode<synchronous>, transform_indices = @transform_25, window_bounds = array<i64: 1, 32>}, {pipeline_mode = #tpu.pipeline_mode<synchronous>, transform_indices = @transform_26, window_bounds = array<i64: 1, 32>}, {pipeline_mode = #tpu.pipeline_mode<synchronous>, transform_indices = @transform_27, window_bounds = array<i64: 1, 32>}, {pipeline_mode = #tpu.pipeline_mode<synchronous>, transform_indices = @transform_28, window_bounds = array<i64: 96, 32>}, {pipeline_mode = #tpu.pipeline_mode<synchronous>, transform_indices = @transform_29, window_bounds = array<i64: 1, 32>}, {pipeline_mode = #tpu.pipeline_mode<synchronous>, transform_indices = @transform_30, window_bounds = array<i64: 1, 32>}, {pipeline_mode = #tpu.pipeline_mode<synchronous>, transform_indices = @transform_31, window_bounds = array<i64: 1, 32>}, {pipeline_mode = #tpu.pipeline_mode<synchronous>, transform_indices = @transform_32, window_bounds = array<i64: 1, 32>}, {pipeline_mode = #tpu.pipeline_mode<synchronous>, transform_indices = @transform_33, window_bounds = array<i64: 1, 32>}, {transform_indices = @transform_34, window_bounds = array<i64: 1, 8, 32>}]} {
    %c0 = arith.constant 0 : index
    %c0_0 = arith.constant 0 : index
    %0 = vector.load %arg5[%c0, %c0_0] : memref<32x96xf32, #tpu.memory_space<vmem>>, vector<32x96xf32>
    %c0_1 = arith.constant 0 : index
    %c0_2 = arith.constant 0 : index
    %1 = vector.load %arg6[%c0_1, %c0_2] : memref<1x96xf32, #tpu.memory_space<vmem>>, vector<1x96xf32>
    %c0_3 = arith.constant 0 : index
    %c0_4 = arith.constant 0 : index
    %2 = vector.load %arg7[%c0_3, %c0_4] : memref<32x32xf32, #tpu.memory_space<vmem>>, vector<32x32xf32>
    %c0_5 = arith.constant 0 : index
    %c0_6 = arith.constant 0 : index
    %3 = vector.load %arg8[%c0_5, %c0_6] : memref<1x32xf32, #tpu.memory_space<vmem>>, vector<1x32xf32>
    %c0_7 = arith.constant 0 : index
    %c0_8 = arith.constant 0 : index
    %4 = vector.load %arg9[%c0_7, %c0_8] : memref<1x32xf32, #tpu.memory_space<vmem>>, vector<1x32xf32>
    %c0_9 = arith.constant 0 : index
    %c0_10 = arith.constant 0 : index
    %5 = vector.load %arg10[%c0_9, %c0_10] : memref<1x32xf32, #tpu.memory_space<vmem>>, vector<1x32xf32>
    %c0_11 = arith.constant 0 : index
    %c0_12 = arith.constant 0 : index
    %6 = vector.load %arg11[%c0_11, %c0_12] : memref<32x64xf32, #tpu.memory_space<vmem>>, vector<32x64xf32>
    %c0_13 = arith.constant 0 : index
    %c0_14 = arith.constant 0 : index
    %7 = vector.load %arg12[%c0_13, %c0_14] : memref<1x64xf32, #tpu.memory_space<vmem>>, vector<1x64xf32>
    %c0_15 = arith.constant 0 : index
    %c0_16 = arith.constant 0 : index
    %8 = vector.load %arg13[%c0_15, %c0_16] : memref<64x32xf32, #tpu.memory_space<vmem>>, vector<64x32xf32>
    %c0_17 = arith.constant 0 : index
    %c0_18 = arith.constant 0 : index
    %9 = vector.load %arg14[%c0_17, %c0_18] : memref<1x32xf32, #tpu.memory_space<vmem>>, vector<1x32xf32>
    %c0_19 = arith.constant 0 : index
    %c0_20 = arith.constant 0 : index
    %10 = vector.load %arg15[%c0_19, %c0_20] : memref<1x32xf32, #tpu.memory_space<vmem>>, vector<1x32xf32>
    %c0_21 = arith.constant 0 : index
    %c0_22 = arith.constant 0 : index
    %11 = vector.load %arg16[%c0_21, %c0_22] : memref<1x32xf32, #tpu.memory_space<vmem>>, vector<1x32xf32>
    %c0_23 = arith.constant 0 : index
    %c0_24 = arith.constant 0 : index
    %12 = vector.load %arg17[%c0_23, %c0_24] : memref<32x96xf32, #tpu.memory_space<vmem>>, vector<32x96xf32>
    %c0_25 = arith.constant 0 : index
    %c0_26 = arith.constant 0 : index
    %13 = vector.load %arg18[%c0_25, %c0_26] : memref<1x96xf32, #tpu.memory_space<vmem>>, vector<1x96xf32>
    %c0_27 = arith.constant 0 : index
    %c0_28 = arith.constant 0 : index
    %14 = vector.load %arg19[%c0_27, %c0_28] : memref<32x32xf32, #tpu.memory_space<vmem>>, vector<32x32xf32>
    %c0_29 = arith.constant 0 : index
    %c0_30 = arith.constant 0 : index
    %15 = vector.load %arg20[%c0_29, %c0_30] : memref<1x32xf32, #tpu.memory_space<vmem>>, vector<1x32xf32>
    %c0_31 = arith.constant 0 : index
    %c0_32 = arith.constant 0 : index
    %16 = vector.load %arg21[%c0_31, %c0_32] : memref<1x32xf32, #tpu.memory_space<vmem>>, vector<1x32xf32>
    %c0_33 = arith.constant 0 : index
    %c0_34 = arith.constant 0 : index
    %17 = vector.load %arg22[%c0_33, %c0_34] : memref<1x32xf32, #tpu.memory_space<vmem>>, vector<1x32xf32>
    %c0_35 = arith.constant 0 : index
    %c0_36 = arith.constant 0 : index
    %18 = vector.load %arg23[%c0_35, %c0_36] : memref<32x64xf32, #tpu.memory_space<vmem>>, vector<32x64xf32>
    %c0_37 = arith.constant 0 : index
    %c0_38 = arith.constant 0 : index
    %19 = vector.load %arg24[%c0_37, %c0_38] : memref<1x64xf32, #tpu.memory_space<vmem>>, vector<1x64xf32>
    %c0_39 = arith.constant 0 : index
    %c0_40 = arith.constant 0 : index
    %20 = vector.load %arg25[%c0_39, %c0_40] : memref<64x32xf32, #tpu.memory_space<vmem>>, vector<64x32xf32>
    %c0_41 = arith.constant 0 : index
    %c0_42 = arith.constant 0 : index
    %21 = vector.load %arg26[%c0_41, %c0_42] : memref<1x32xf32, #tpu.memory_space<vmem>>, vector<1x32xf32>
    %c0_43 = arith.constant 0 : index
    %c0_44 = arith.constant 0 : index
    %22 = vector.load %arg27[%c0_43, %c0_44] : memref<1x32xf32, #tpu.memory_space<vmem>>, vector<1x32xf32>
    %c0_45 = arith.constant 0 : index
    %c0_46 = arith.constant 0 : index
    %23 = vector.load %arg28[%c0_45, %c0_46] : memref<1x32xf32, #tpu.memory_space<vmem>>, vector<1x32xf32>
    %c0_47 = arith.constant 0 : index
    %c0_48 = arith.constant 0 : index
    %24 = vector.load %arg29[%c0_47, %c0_48] : memref<96x32xf32, #tpu.memory_space<vmem>>, vector<96x32xf32>
    %c0_49 = arith.constant 0 : index
    %c0_50 = arith.constant 0 : index
    %25 = vector.load %arg30[%c0_49, %c0_50] : memref<1x32xf32, #tpu.memory_space<vmem>>, vector<1x32xf32>
    %c0_51 = arith.constant 0 : index
    %c0_52 = arith.constant 0 : index
    %26 = vector.load %arg31[%c0_51, %c0_52] : memref<1x32xf32, #tpu.memory_space<vmem>>, vector<1x32xf32>
    %c0_53 = arith.constant 0 : index
    %c0_54 = arith.constant 0 : index
    %27 = vector.load %arg32[%c0_53, %c0_54] : memref<1x32xf32, #tpu.memory_space<vmem>>, vector<1x32xf32>
    %c0_55 = arith.constant 0 : index
    %c0_56 = arith.constant 0 : index
    %28 = vector.load %arg33[%c0_55, %c0_56] : memref<1x32xf32, #tpu.memory_space<vmem>>, vector<1x32xf32>
    %c0_57 = arith.constant 0 : index
    %c0_58 = arith.constant 0 : index
    %29 = vector.load %arg34[%c0_57, %c0_58] : memref<1x32xf32, #tpu.memory_space<vmem>>, vector<1x32xf32>
    %c0_59 = arith.constant 0 : index
    %c0_60 = arith.constant 0 : index
    %c0_61 = arith.constant 0 : index
    %30 = vector.load %arg1[%c0_59, %c0_60, %c0_61] : memref<1x16x4xf32, #tpu.memory_space<vmem>>, vector<1x16x4xf32>
    %31 = vector.shape_cast %30 : vector<1x16x4xf32> to vector<16x4xf32>
    %c0_62 = arith.constant 0 : index
    %c0_63 = arith.constant 0 : index
    %c0_64 = arith.constant 0 : index
    %32 = vector.load %arg2[%c0_62, %c0_63, %c0_64] : memref<1x16x4xf32, #tpu.memory_space<vmem>>, vector<1x16x4xf32>
    %33 = vector.shape_cast %32 : vector<1x16x4xf32> to vector<16x4xf32>
    %34 = vector.extract_strided_slice %31 {offsets = [15, 0], sizes = [1, 4], strides = [1, 1]} : vector<16x4xf32> to vector<1x4xf32>
    %35 = vector.extract_strided_slice %31 {offsets = [0, 0], sizes = [15, 4], strides = [1, 1]} : vector<16x4xf32> to vector<15x4xf32>
    %36 = tpu.concatenate %34, %35 in 0 : vector<1x4xf32>, vector<15x4xf32> -> vector<16x4xf32>
    %37 = vector.extract_strided_slice %31 {offsets = [1, 0], sizes = [15, 4], strides = [1, 1]} : vector<16x4xf32> to vector<15x4xf32>
    %38 = vector.extract_strided_slice %31 {offsets = [0, 0], sizes = [1, 4], strides = [1, 1]} : vector<16x4xf32> to vector<1x4xf32>
    %39 = tpu.concatenate %37, %38 in 0 : vector<15x4xf32>, vector<1x4xf32> -> vector<16x4xf32>
    %40 = tpu.concatenate %36, %31, %39, %33 in 1 : vector<16x4xf32>, vector<16x4xf32>, vector<16x4xf32>, vector<16x4xf32> -> vector<16x16xf32>
    %c0_65 = arith.constant 0 : index
    %c0_66 = arith.constant 0 : index
    %41 = vector.load %arg3[%c0_65, %c0_66] : memref<16x32xf32, #tpu.memory_space<vmem>>, vector<16x32xf32>
    %cst = arith.constant dense<0.000000e+00> : vector<16x32xf32>
    %42 = tpu.matmul %40, %41, %cst {dimension_numbers = #tpu.dot_dimension_numbers<[1], [0], [0], [1], [0, 0, 1, 1], [], []>} : vector<16x16xf32>, vector<16x32xf32>, vector<16x32xf32> -> vector<16x32xf32>
    %c0_67 = arith.constant 0 : index
    %c0_68 = arith.constant 0 : index
    %43 = vector.load %arg4[%c0_67, %c0_68] : memref<16x32xf32, #tpu.memory_space<vmem>>, vector<16x32xf32>
    %44 = arith.addf %42, %43 : vector<16x32xf32>
    %cst_69 = arith.constant dense<0.000000e+00> : vector<16x96xf32>
    %45 = tpu.matmul %44, %0, %cst_69 {dimension_numbers = #tpu.dot_dimension_numbers<[1], [0], [0], [1], [0, 0, 1, 1], [], []>} : vector<16x32xf32>, vector<32x96xf32>, vector<16x96xf32> -> vector<16x96xf32>
    %46 = vector.broadcast %1 : vector<1x96xf32> to vector<16x96xf32>
    %47 = arith.addf %45, %46 : vector<16x96xf32>
    %48 = vector.extract_strided_slice %47 {offsets = [0, 0], sizes = [16, 8], strides = [1, 1]} : vector<16x96xf32> to vector<16x8xf32>
    %49 = vector.extract_strided_slice %47 {offsets = [0, 8], sizes = [16, 8], strides = [1, 1]} : vector<16x96xf32> to vector<16x8xf32>
    %50 = vector.extract_strided_slice %47 {offsets = [0, 16], sizes = [16, 8], strides = [1, 1]} : vector<16x96xf32> to vector<16x8xf32>
    %51 = vector.extract_strided_slice %47 {offsets = [0, 24], sizes = [16, 8], strides = [1, 1]} : vector<16x96xf32> to vector<16x8xf32>
    %52 = vector.shape_cast %48 : vector<16x8xf32> to vector<1x16x8xf32>
    %53 = vector.shape_cast %49 : vector<16x8xf32> to vector<1x16x8xf32>
    %54 = vector.shape_cast %50 : vector<16x8xf32> to vector<1x16x8xf32>
    %55 = vector.shape_cast %51 : vector<16x8xf32> to vector<1x16x8xf32>
    %56 = tpu.concatenate %52, %53, %54, %55 in 0 : vector<1x16x8xf32>, vector<1x16x8xf32>, vector<1x16x8xf32>, vector<1x16x8xf32> -> vector<4x16x8xf32>
    %57 = vector.extract_strided_slice %47 {offsets = [0, 32], sizes = [16, 8], strides = [1, 1]} : vector<16x96xf32> to vector<16x8xf32>
    %58 = vector.extract_strided_slice %47 {offsets = [0, 40], sizes = [16, 8], strides = [1, 1]} : vector<16x96xf32> to vector<16x8xf32>
    %59 = vector.extract_strided_slice %47 {offsets = [0, 48], sizes = [16, 8], strides = [1, 1]} : vector<16x96xf32> to vector<16x8xf32>
    %60 = vector.extract_strided_slice %47 {offsets = [0, 56], sizes = [16, 8], strides = [1, 1]} : vector<16x96xf32> to vector<16x8xf32>
    %61 = vector.shape_cast %57 : vector<16x8xf32> to vector<1x16x8xf32>
    %62 = vector.shape_cast %58 : vector<16x8xf32> to vector<1x16x8xf32>
    %63 = vector.shape_cast %59 : vector<16x8xf32> to vector<1x16x8xf32>
    %64 = vector.shape_cast %60 : vector<16x8xf32> to vector<1x16x8xf32>
    %65 = tpu.concatenate %61, %62, %63, %64 in 0 : vector<1x16x8xf32>, vector<1x16x8xf32>, vector<1x16x8xf32>, vector<1x16x8xf32> -> vector<4x16x8xf32>
    %66 = vector.extract_strided_slice %47 {offsets = [0, 64], sizes = [16, 8], strides = [1, 1]} : vector<16x96xf32> to vector<16x8xf32>
    %67 = vector.extract_strided_slice %47 {offsets = [0, 72], sizes = [16, 8], strides = [1, 1]} : vector<16x96xf32> to vector<16x8xf32>
    %68 = vector.extract_strided_slice %47 {offsets = [0, 80], sizes = [16, 8], strides = [1, 1]} : vector<16x96xf32> to vector<16x8xf32>
    %69 = vector.extract_strided_slice %47 {offsets = [0, 88], sizes = [16, 8], strides = [1, 1]} : vector<16x96xf32> to vector<16x8xf32>
    %70 = vector.shape_cast %66 : vector<16x8xf32> to vector<1x16x8xf32>
    %71 = vector.shape_cast %67 : vector<16x8xf32> to vector<1x16x8xf32>
    %72 = vector.shape_cast %68 : vector<16x8xf32> to vector<1x16x8xf32>
    %73 = vector.shape_cast %69 : vector<16x8xf32> to vector<1x16x8xf32>
    %74 = tpu.concatenate %70, %71, %72, %73 in 0 : vector<1x16x8xf32>, vector<1x16x8xf32>, vector<1x16x8xf32>, vector<1x16x8xf32> -> vector<4x16x8xf32>
    "tpu.trace_start"() <{level = 10 : i32, message = "hqe,hke->hqk"}> : () -> ()
    %cst_70 = arith.constant dense<0.000000e+00> : vector<4x16x16xf32>
    %75 = tpu.matmul %56, %65, %cst_70 {dimension_numbers = #tpu.dot_dimension_numbers<[2], [2], [1], [1], [0, 0, 0, 1, 1, 1], [0], [0]>} : vector<4x16x8xf32>, vector<4x16x8xf32>, vector<4x16x16xf32> -> vector<4x16x16xf32>
    "tpu.trace_stop"() : () -> ()
    %cst_71 = arith.constant 0.353553385 : f32
    %76 = vector.broadcast %cst_71 : f32 to vector<4x16x16xf32>
    %77 = arith.mulf %75, %76 : vector<4x16x16xf32>
    %cst_72 = arith.constant dense<0xFF800000> : vector<4x16xf32>
    %78 = vector.multi_reduction <maximumf>, %77, %cst_72 [2] : vector<4x16x16xf32> to vector<4x16xf32>
    %79 = vector.shape_cast %78 : vector<4x16xf32> to vector<4x16x1xf32>
    %80 = vector.broadcast %79 : vector<4x16x1xf32> to vector<4x16x16xf32>
    %81 = arith.subf %77, %80 : vector<4x16x16xf32>
    %82 = math.exp %81 : vector<4x16x16xf32>
    %cst_73 = arith.constant dense<0.000000e+00> : vector<4x16xf32>
    %83 = vector.multi_reduction <add>, %82, %cst_73 [2] : vector<4x16x16xf32> to vector<4x16xf32>
    %84 = vector.shape_cast %83 : vector<4x16xf32> to vector<4x16x1xf32>
    %85 = tpu.reciprocal %84 {approx = true} : vector<4x16x1xf32> -> vector<4x16x1xf32>
    %86 = vector.broadcast %85 : vector<4x16x1xf32> to vector<4x16x16xf32>
    %87 = arith.mulf %82, %86 : vector<4x16x16xf32>
    "tpu.trace_start"() <{level = 10 : i32, message = "hqk,hke->hqe"}> : () -> ()
    %cst_74 = arith.constant dense<0.000000e+00> : vector<4x16x8xf32>
    %88 = tpu.matmul %87, %74, %cst_74 {dimension_numbers = #tpu.dot_dimension_numbers<[2], [1], [1], [2], [0, 0, 0, 1, 1, 2], [0], [0]>} : vector<4x16x16xf32>, vector<4x16x8xf32>, vector<4x16x8xf32> -> vector<4x16x8xf32>
    "tpu.trace_stop"() : () -> ()
    %89 = vector.extract_strided_slice %88 {offsets = [0, 0, 0], sizes = [1, 16, 8], strides = [1, 1, 1]} : vector<4x16x8xf32> to vector<1x16x8xf32>
    %90 = vector.shape_cast %89 : vector<1x16x8xf32> to vector<16x8xf32>
    %91 = vector.extract_strided_slice %88 {offsets = [1, 0, 0], sizes = [1, 16, 8], strides = [1, 1, 1]} : vector<4x16x8xf32> to vector<1x16x8xf32>
    %92 = vector.shape_cast %91 : vector<1x16x8xf32> to vector<16x8xf32>
    %93 = vector.extract_strided_slice %88 {offsets = [2, 0, 0], sizes = [1, 16, 8], strides = [1, 1, 1]} : vector<4x16x8xf32> to vector<1x16x8xf32>
    %94 = vector.shape_cast %93 : vector<1x16x8xf32> to vector<16x8xf32>
    %95 = vector.extract_strided_slice %88 {offsets = [3, 0, 0], sizes = [1, 16, 8], strides = [1, 1, 1]} : vector<4x16x8xf32> to vector<1x16x8xf32>
    %96 = vector.shape_cast %95 : vector<1x16x8xf32> to vector<16x8xf32>
    %97 = tpu.concatenate %90, %92, %94, %96 in 1 : vector<16x8xf32>, vector<16x8xf32>, vector<16x8xf32>, vector<16x8xf32> -> vector<16x32xf32>
    %cst_75 = arith.constant dense<0.000000e+00> : vector<16x32xf32>
    %98 = tpu.matmul %97, %2, %cst_75 {dimension_numbers = #tpu.dot_dimension_numbers<[1], [0], [0], [1], [0, 0, 1, 1], [], []>} : vector<16x32xf32>, vector<32x32xf32>, vector<16x32xf32> -> vector<16x32xf32>
    %99 = vector.broadcast %3 : vector<1x32xf32> to vector<16x32xf32>
    %100 = arith.addf %98, %99 : vector<16x32xf32>
    %101 = arith.addf %44, %100 : vector<16x32xf32>
    %cst_76 = arith.constant dense<0.000000e+00> : vector<16xf32>
    %102 = vector.multi_reduction <add>, %101, %cst_76 [1] : vector<16x32xf32> to vector<16xf32>
    %103 = vector.shape_cast %102 : vector<16xf32> to vector<16x1xf32>
    %cst_77 = arith.constant 3.200000e+01 : f32
    %104 = vector.broadcast %cst_77 : f32 to vector<16x1xf32>
    %105 = arith.divf %103, %104 : vector<16x1xf32>
    %106 = vector.broadcast %105 : vector<16x1xf32> to vector<16x32xf32>
    %107 = arith.subf %101, %106 : vector<16x32xf32>
    %108 = arith.mulf %107, %107 : vector<16x32xf32>
    %cst_78 = arith.constant dense<0.000000e+00> : vector<16xf32>
    %109 = vector.multi_reduction <add>, %108, %cst_78 [1] : vector<16x32xf32> to vector<16xf32>
    %110 = vector.shape_cast %109 : vector<16xf32> to vector<16x1xf32>
    %cst_79 = arith.constant 3.200000e+01 : f32
    %111 = vector.broadcast %cst_79 : f32 to vector<16x1xf32>
    %112 = arith.divf %110, %111 : vector<16x1xf32>
    %113 = vector.broadcast %105 : vector<16x1xf32> to vector<16x32xf32>
    %114 = arith.subf %101, %113 : vector<16x32xf32>
    %cst_80 = arith.constant 9.99999974E-6 : f32
    %115 = vector.broadcast %cst_80 : f32 to vector<16x1xf32>
    %116 = arith.addf %112, %115 : vector<16x1xf32>
    %117 = math.rsqrt %116 : vector<16x1xf32>
    %118 = vector.broadcast %117 : vector<16x1xf32> to vector<16x32xf32>
    %119 = arith.mulf %114, %118 : vector<16x32xf32>
    %120 = vector.broadcast %4 : vector<1x32xf32> to vector<16x32xf32>
    %121 = arith.mulf %119, %120 : vector<16x32xf32>
    %122 = vector.broadcast %5 : vector<1x32xf32> to vector<16x32xf32>
    %123 = arith.addf %121, %122 : vector<16x32xf32>
    %cst_81 = arith.constant dense<0.000000e+00> : vector<16x64xf32>
    %124 = tpu.matmul %123, %6, %cst_81 {dimension_numbers = #tpu.dot_dimension_numbers<[1], [0], [0], [1], [0, 0, 1, 1], [], []>} : vector<16x32xf32>, vector<32x64xf32>, vector<16x64xf32> -> vector<16x64xf32>
    %125 = vector.broadcast %7 : vector<1x64xf32> to vector<16x64xf32>
    %126 = arith.addf %124, %125 : vector<16x64xf32>
    %cst_82 = arith.constant 0.000000e+00 : f32
    %127 = vector.broadcast %cst_82 : f32 to vector<16x64xf32>
    %128 = arith.maximumf %126, %127 : vector<16x64xf32>
    %cst_83 = arith.constant dense<0.000000e+00> : vector<16x32xf32>
    %129 = tpu.matmul %128, %8, %cst_83 {dimension_numbers = #tpu.dot_dimension_numbers<[1], [0], [0], [1], [0, 0, 1, 1], [], []>} : vector<16x64xf32>, vector<64x32xf32>, vector<16x32xf32> -> vector<16x32xf32>
    %130 = vector.broadcast %9 : vector<1x32xf32> to vector<16x32xf32>
    %131 = arith.addf %129, %130 : vector<16x32xf32>
    %132 = arith.addf %123, %131 : vector<16x32xf32>
    %cst_84 = arith.constant dense<0.000000e+00> : vector<16xf32>
    %133 = vector.multi_reduction <add>, %132, %cst_84 [1] : vector<16x32xf32> to vector<16xf32>
    %134 = vector.shape_cast %133 : vector<16xf32> to vector<16x1xf32>
    %cst_85 = arith.constant 3.200000e+01 : f32
    %135 = vector.broadcast %cst_85 : f32 to vector<16x1xf32>
    %136 = arith.divf %134, %135 : vector<16x1xf32>
    %137 = vector.broadcast %136 : vector<16x1xf32> to vector<16x32xf32>
    %138 = arith.subf %132, %137 : vector<16x32xf32>
    %139 = arith.mulf %138, %138 : vector<16x32xf32>
    %cst_86 = arith.constant dense<0.000000e+00> : vector<16xf32>
    %140 = vector.multi_reduction <add>, %139, %cst_86 [1] : vector<16x32xf32> to vector<16xf32>
    %141 = vector.shape_cast %140 : vector<16xf32> to vector<16x1xf32>
    %cst_87 = arith.constant 3.200000e+01 : f32
    %142 = vector.broadcast %cst_87 : f32 to vector<16x1xf32>
    %143 = arith.divf %141, %142 : vector<16x1xf32>
    %144 = vector.broadcast %136 : vector<16x1xf32> to vector<16x32xf32>
    %145 = arith.subf %132, %144 : vector<16x32xf32>
    %cst_88 = arith.constant 9.99999974E-6 : f32
    %146 = vector.broadcast %cst_88 : f32 to vector<16x1xf32>
    %147 = arith.addf %143, %146 : vector<16x1xf32>
    %148 = math.rsqrt %147 : vector<16x1xf32>
    %149 = vector.broadcast %148 : vector<16x1xf32> to vector<16x32xf32>
    %150 = arith.mulf %145, %149 : vector<16x32xf32>
    %151 = vector.broadcast %10 : vector<1x32xf32> to vector<16x32xf32>
    %152 = arith.mulf %150, %151 : vector<16x32xf32>
    %153 = vector.broadcast %11 : vector<1x32xf32> to vector<16x32xf32>
    %154 = arith.addf %152, %153 : vector<16x32xf32>
    %155 = vector.extract_strided_slice %154 {offsets = [15, 0], sizes = [1, 32], strides = [1, 1]} : vector<16x32xf32> to vector<1x32xf32>
    %156 = vector.extract_strided_slice %154 {offsets = [0, 0], sizes = [15, 32], strides = [1, 1]} : vector<16x32xf32> to vector<15x32xf32>
    %157 = tpu.concatenate %155, %156 in 0 : vector<1x32xf32>, vector<15x32xf32> -> vector<16x32xf32>
    %158 = vector.extract_strided_slice %154 {offsets = [1, 0], sizes = [15, 32], strides = [1, 1]} : vector<16x32xf32> to vector<15x32xf32>
    %159 = vector.extract_strided_slice %154 {offsets = [0, 0], sizes = [1, 32], strides = [1, 1]} : vector<16x32xf32> to vector<1x32xf32>
    %160 = tpu.concatenate %158, %159 in 0 : vector<15x32xf32>, vector<1x32xf32> -> vector<16x32xf32>
    %161 = tpu.concatenate %157, %154, %160 in 1 : vector<16x32xf32>, vector<16x32xf32>, vector<16x32xf32> -> vector<16x96xf32>
    %cst_89 = arith.constant dense<0.000000e+00> : vector<16x32xf32>
    %162 = tpu.matmul %161, %24, %cst_89 {dimension_numbers = #tpu.dot_dimension_numbers<[1], [0], [0], [1], [0, 0, 1, 1], [], []>} : vector<16x96xf32>, vector<96x32xf32>, vector<16x32xf32> -> vector<16x32xf32>
    %163 = vector.broadcast %25 : vector<1x32xf32> to vector<16x32xf32>
    %164 = arith.addf %162, %163 : vector<16x32xf32>
    %165 = vector.broadcast %26 : vector<1x32xf32> to vector<16x32xf32>
    %166 = arith.mulf %164, %165 : vector<16x32xf32>
    %167 = vector.broadcast %27 : vector<1x32xf32> to vector<16x32xf32>
    %168 = arith.addf %166, %167 : vector<16x32xf32>
    %cst_90 = arith.constant 0.000000e+00 : f32
    %169 = vector.broadcast %cst_90 : f32 to vector<16x32xf32>
    %170 = arith.cmpf ogt, %168, %169 : vector<16x32xf32>
    %cst_91 = arith.constant 0.000000e+00 : f32
    %171 = vector.broadcast %cst_91 : f32 to vector<16x32xf32>
    %172 = arith.minimumf %168, %171 : vector<16x32xf32>
    %173 = math.exp %172 : vector<16x32xf32>
    %cst_92 = arith.constant 1.000000e+00 : f32
    %174 = vector.broadcast %cst_92 : f32 to vector<16x32xf32>
    %175 = arith.subf %173, %174 : vector<16x32xf32>
    %176 = arith.select %170, %168, %175 : vector<16x32xi1>, vector<16x32xf32>
    %cst_93 = arith.constant 0xFF800000 : f32
    %177 = vector.broadcast %cst_93 : f32 to vector<1x32xf32>
    %178 = vector.extract_strided_slice %176 {offsets = [0, 0], sizes = [15, 32], strides = [1, 1]} : vector<16x32xf32> to vector<15x32xf32>
    %179 = tpu.concatenate %177, %178 in 0 : vector<1x32xf32>, vector<15x32xf32> -> vector<16x32xf32>
    %180 = vector.extract_strided_slice %176 {offsets = [1, 0], sizes = [15, 32], strides = [1, 1]} : vector<16x32xf32> to vector<15x32xf32>
    %181 = tpu.concatenate %180, %177 in 0 : vector<15x32xf32>, vector<1x32xf32> -> vector<16x32xf32>
    %182 = arith.maximumf %179, %176 : vector<16x32xf32>
    %183 = arith.maximumf %182, %181 : vector<16x32xf32>
    %184 = vector.extract_strided_slice %183 {offsets = [0, 0], sizes = [1, 32], strides = [1, 1]} : vector<16x32xf32> to vector<1x32xf32>
    %185 = vector.extract_strided_slice %183 {offsets = [2, 0], sizes = [1, 32], strides = [1, 1]} : vector<16x32xf32> to vector<1x32xf32>
    %186 = vector.extract_strided_slice %183 {offsets = [4, 0], sizes = [1, 32], strides = [1, 1]} : vector<16x32xf32> to vector<1x32xf32>
    %187 = vector.extract_strided_slice %183 {offsets = [6, 0], sizes = [1, 32], strides = [1, 1]} : vector<16x32xf32> to vector<1x32xf32>
    %188 = vector.extract_strided_slice %183 {offsets = [8, 0], sizes = [1, 32], strides = [1, 1]} : vector<16x32xf32> to vector<1x32xf32>
    %189 = vector.extract_strided_slice %183 {offsets = [10, 0], sizes = [1, 32], strides = [1, 1]} : vector<16x32xf32> to vector<1x32xf32>
    %190 = vector.extract_strided_slice %183 {offsets = [12, 0], sizes = [1, 32], strides = [1, 1]} : vector<16x32xf32> to vector<1x32xf32>
    %191 = vector.extract_strided_slice %183 {offsets = [14, 0], sizes = [1, 32], strides = [1, 1]} : vector<16x32xf32> to vector<1x32xf32>
    %192 = tpu.concatenate %184, %185, %186, %187, %188, %189, %190, %191 in 0 : vector<1x32xf32>, vector<1x32xf32>, vector<1x32xf32>, vector<1x32xf32>, vector<1x32xf32>, vector<1x32xf32>, vector<1x32xf32>, vector<1x32xf32> -> vector<8x32xf32>
    %cst_94 = arith.constant dense<0.000000e+00> : vector<8x96xf32>
    %193 = tpu.matmul %192, %12, %cst_94 {dimension_numbers = #tpu.dot_dimension_numbers<[1], [0], [0], [1], [0, 0, 1, 1], [], []>} : vector<8x32xf32>, vector<32x96xf32>, vector<8x96xf32> -> vector<8x96xf32>
    %194 = vector.broadcast %13 : vector<1x96xf32> to vector<8x96xf32>
    %195 = arith.addf %193, %194 : vector<8x96xf32>
    %196 = vector.extract_strided_slice %195 {offsets = [0, 0], sizes = [8, 8], strides = [1, 1]} : vector<8x96xf32> to vector<8x8xf32>
    %197 = vector.extract_strided_slice %195 {offsets = [0, 8], sizes = [8, 8], strides = [1, 1]} : vector<8x96xf32> to vector<8x8xf32>
    %198 = vector.extract_strided_slice %195 {offsets = [0, 16], sizes = [8, 8], strides = [1, 1]} : vector<8x96xf32> to vector<8x8xf32>
    %199 = vector.extract_strided_slice %195 {offsets = [0, 24], sizes = [8, 8], strides = [1, 1]} : vector<8x96xf32> to vector<8x8xf32>
    %200 = vector.shape_cast %196 : vector<8x8xf32> to vector<1x8x8xf32>
    %201 = vector.shape_cast %197 : vector<8x8xf32> to vector<1x8x8xf32>
    %202 = vector.shape_cast %198 : vector<8x8xf32> to vector<1x8x8xf32>
    %203 = vector.shape_cast %199 : vector<8x8xf32> to vector<1x8x8xf32>
    %204 = tpu.concatenate %200, %201, %202, %203 in 0 : vector<1x8x8xf32>, vector<1x8x8xf32>, vector<1x8x8xf32>, vector<1x8x8xf32> -> vector<4x8x8xf32>
    %205 = vector.extract_strided_slice %195 {offsets = [0, 32], sizes = [8, 8], strides = [1, 1]} : vector<8x96xf32> to vector<8x8xf32>
    %206 = vector.extract_strided_slice %195 {offsets = [0, 40], sizes = [8, 8], strides = [1, 1]} : vector<8x96xf32> to vector<8x8xf32>
    %207 = vector.extract_strided_slice %195 {offsets = [0, 48], sizes = [8, 8], strides = [1, 1]} : vector<8x96xf32> to vector<8x8xf32>
    %208 = vector.extract_strided_slice %195 {offsets = [0, 56], sizes = [8, 8], strides = [1, 1]} : vector<8x96xf32> to vector<8x8xf32>
    %209 = vector.shape_cast %205 : vector<8x8xf32> to vector<1x8x8xf32>
    %210 = vector.shape_cast %206 : vector<8x8xf32> to vector<1x8x8xf32>
    %211 = vector.shape_cast %207 : vector<8x8xf32> to vector<1x8x8xf32>
    %212 = vector.shape_cast %208 : vector<8x8xf32> to vector<1x8x8xf32>
    %213 = tpu.concatenate %209, %210, %211, %212 in 0 : vector<1x8x8xf32>, vector<1x8x8xf32>, vector<1x8x8xf32>, vector<1x8x8xf32> -> vector<4x8x8xf32>
    %214 = vector.extract_strided_slice %195 {offsets = [0, 64], sizes = [8, 8], strides = [1, 1]} : vector<8x96xf32> to vector<8x8xf32>
    %215 = vector.extract_strided_slice %195 {offsets = [0, 72], sizes = [8, 8], strides = [1, 1]} : vector<8x96xf32> to vector<8x8xf32>
    %216 = vector.extract_strided_slice %195 {offsets = [0, 80], sizes = [8, 8], strides = [1, 1]} : vector<8x96xf32> to vector<8x8xf32>
    %217 = vector.extract_strided_slice %195 {offsets = [0, 88], sizes = [8, 8], strides = [1, 1]} : vector<8x96xf32> to vector<8x8xf32>
    %218 = vector.shape_cast %214 : vector<8x8xf32> to vector<1x8x8xf32>
    %219 = vector.shape_cast %215 : vector<8x8xf32> to vector<1x8x8xf32>
    %220 = vector.shape_cast %216 : vector<8x8xf32> to vector<1x8x8xf32>
    %221 = vector.shape_cast %217 : vector<8x8xf32> to vector<1x8x8xf32>
    %222 = tpu.concatenate %218, %219, %220, %221 in 0 : vector<1x8x8xf32>, vector<1x8x8xf32>, vector<1x8x8xf32>, vector<1x8x8xf32> -> vector<4x8x8xf32>
    "tpu.trace_start"() <{level = 10 : i32, message = "hqe,hke->hqk"}> : () -> ()
    %cst_95 = arith.constant dense<0.000000e+00> : vector<4x8x8xf32>
    %223 = tpu.matmul %204, %213, %cst_95 {dimension_numbers = #tpu.dot_dimension_numbers<[2], [2], [1], [1], [0, 0, 0, 1, 1, 1], [0], [0]>} : vector<4x8x8xf32>, vector<4x8x8xf32>, vector<4x8x8xf32> -> vector<4x8x8xf32>
    "tpu.trace_stop"() : () -> ()
    %cst_96 = arith.constant 0.353553385 : f32
    %224 = vector.broadcast %cst_96 : f32 to vector<4x8x8xf32>
    %225 = arith.mulf %223, %224 : vector<4x8x8xf32>
    %cst_97 = arith.constant dense<0xFF800000> : vector<4x8xf32>
    %226 = vector.multi_reduction <maximumf>, %225, %cst_97 [2] : vector<4x8x8xf32> to vector<4x8xf32>
    %227 = vector.shape_cast %226 : vector<4x8xf32> to vector<4x8x1xf32>
    %228 = vector.broadcast %227 : vector<4x8x1xf32> to vector<4x8x8xf32>
    %229 = arith.subf %225, %228 : vector<4x8x8xf32>
    %230 = math.exp %229 : vector<4x8x8xf32>
    %cst_98 = arith.constant dense<0.000000e+00> : vector<4x8xf32>
    %231 = vector.multi_reduction <add>, %230, %cst_98 [2] : vector<4x8x8xf32> to vector<4x8xf32>
    %232 = vector.shape_cast %231 : vector<4x8xf32> to vector<4x8x1xf32>
    %233 = tpu.reciprocal %232 {approx = true} : vector<4x8x1xf32> -> vector<4x8x1xf32>
    %234 = vector.broadcast %233 : vector<4x8x1xf32> to vector<4x8x8xf32>
    %235 = arith.mulf %230, %234 : vector<4x8x8xf32>
    "tpu.trace_start"() <{level = 10 : i32, message = "hqk,hke->hqe"}> : () -> ()
    %cst_99 = arith.constant dense<0.000000e+00> : vector<4x8x8xf32>
    %236 = tpu.matmul %235, %222, %cst_99 {dimension_numbers = #tpu.dot_dimension_numbers<[2], [1], [1], [2], [0, 0, 0, 1, 1, 2], [0], [0]>} : vector<4x8x8xf32>, vector<4x8x8xf32>, vector<4x8x8xf32> -> vector<4x8x8xf32>
    "tpu.trace_stop"() : () -> ()
    %237 = vector.extract_strided_slice %236 {offsets = [0, 0, 0], sizes = [1, 8, 8], strides = [1, 1, 1]} : vector<4x8x8xf32> to vector<1x8x8xf32>
    %238 = vector.shape_cast %237 : vector<1x8x8xf32> to vector<8x8xf32>
    %239 = vector.extract_strided_slice %236 {offsets = [1, 0, 0], sizes = [1, 8, 8], strides = [1, 1, 1]} : vector<4x8x8xf32> to vector<1x8x8xf32>
    %240 = vector.shape_cast %239 : vector<1x8x8xf32> to vector<8x8xf32>
    %241 = vector.extract_strided_slice %236 {offsets = [2, 0, 0], sizes = [1, 8, 8], strides = [1, 1, 1]} : vector<4x8x8xf32> to vector<1x8x8xf32>
    %242 = vector.shape_cast %241 : vector<1x8x8xf32> to vector<8x8xf32>
    %243 = vector.extract_strided_slice %236 {offsets = [3, 0, 0], sizes = [1, 8, 8], strides = [1, 1, 1]} : vector<4x8x8xf32> to vector<1x8x8xf32>
    %244 = vector.shape_cast %243 : vector<1x8x8xf32> to vector<8x8xf32>
    %245 = tpu.concatenate %238, %240, %242, %244 in 1 : vector<8x8xf32>, vector<8x8xf32>, vector<8x8xf32>, vector<8x8xf32> -> vector<8x32xf32>
    %cst_100 = arith.constant dense<0.000000e+00> : vector<8x32xf32>
    %246 = tpu.matmul %245, %14, %cst_100 {dimension_numbers = #tpu.dot_dimension_numbers<[1], [0], [0], [1], [0, 0, 1, 1], [], []>} : vector<8x32xf32>, vector<32x32xf32>, vector<8x32xf32> -> vector<8x32xf32>
    %247 = vector.broadcast %15 : vector<1x32xf32> to vector<8x32xf32>
    %248 = arith.addf %246, %247 : vector<8x32xf32>
    %249 = arith.addf %192, %248 : vector<8x32xf32>
    %cst_101 = arith.constant dense<0.000000e+00> : vector<8xf32>
    %250 = vector.multi_reduction <add>, %249, %cst_101 [1] : vector<8x32xf32> to vector<8xf32>
    %251 = vector.shape_cast %250 : vector<8xf32> to vector<8x1xf32>
    %cst_102 = arith.constant 3.200000e+01 : f32
    %252 = vector.broadcast %cst_102 : f32 to vector<8x1xf32>
    %253 = arith.divf %251, %252 : vector<8x1xf32>
    %254 = vector.broadcast %253 : vector<8x1xf32> to vector<8x32xf32>
    %255 = arith.subf %249, %254 : vector<8x32xf32>
    %256 = arith.mulf %255, %255 : vector<8x32xf32>
    %cst_103 = arith.constant dense<0.000000e+00> : vector<8xf32>
    %257 = vector.multi_reduction <add>, %256, %cst_103 [1] : vector<8x32xf32> to vector<8xf32>
    %258 = vector.shape_cast %257 : vector<8xf32> to vector<8x1xf32>
    %cst_104 = arith.constant 3.200000e+01 : f32
    %259 = vector.broadcast %cst_104 : f32 to vector<8x1xf32>
    %260 = arith.divf %258, %259 : vector<8x1xf32>
    %261 = vector.broadcast %253 : vector<8x1xf32> to vector<8x32xf32>
    %262 = arith.subf %249, %261 : vector<8x32xf32>
    %cst_105 = arith.constant 9.99999974E-6 : f32
    %263 = vector.broadcast %cst_105 : f32 to vector<8x1xf32>
    %264 = arith.addf %260, %263 : vector<8x1xf32>
    %265 = math.rsqrt %264 : vector<8x1xf32>
    %266 = vector.broadcast %265 : vector<8x1xf32> to vector<8x32xf32>
    %267 = arith.mulf %262, %266 : vector<8x32xf32>
    %268 = vector.broadcast %16 : vector<1x32xf32> to vector<8x32xf32>
    %269 = arith.mulf %267, %268 : vector<8x32xf32>
    %270 = vector.broadcast %17 : vector<1x32xf32> to vector<8x32xf32>
    %271 = arith.addf %269, %270 : vector<8x32xf32>
    %cst_106 = arith.constant dense<0.000000e+00> : vector<8x64xf32>
    %272 = tpu.matmul %271, %18, %cst_106 {dimension_numbers = #tpu.dot_dimension_numbers<[1], [0], [0], [1], [0, 0, 1, 1], [], []>} : vector<8x32xf32>, vector<32x64xf32>, vector<8x64xf32> -> vector<8x64xf32>
    %273 = vector.broadcast %19 : vector<1x64xf32> to vector<8x64xf32>
    %274 = arith.addf %272, %273 : vector<8x64xf32>
    %cst_107 = arith.constant 0.000000e+00 : f32
    %275 = vector.broadcast %cst_107 : f32 to vector<8x64xf32>
    %276 = arith.maximumf %274, %275 : vector<8x64xf32>
    %cst_108 = arith.constant dense<0.000000e+00> : vector<8x32xf32>
    %277 = tpu.matmul %276, %20, %cst_108 {dimension_numbers = #tpu.dot_dimension_numbers<[1], [0], [0], [1], [0, 0, 1, 1], [], []>} : vector<8x64xf32>, vector<64x32xf32>, vector<8x32xf32> -> vector<8x32xf32>
    %278 = vector.broadcast %21 : vector<1x32xf32> to vector<8x32xf32>
    %279 = arith.addf %277, %278 : vector<8x32xf32>
    %280 = arith.addf %271, %279 : vector<8x32xf32>
    %cst_109 = arith.constant dense<0.000000e+00> : vector<8xf32>
    %281 = vector.multi_reduction <add>, %280, %cst_109 [1] : vector<8x32xf32> to vector<8xf32>
    %282 = vector.shape_cast %281 : vector<8xf32> to vector<8x1xf32>
    %cst_110 = arith.constant 3.200000e+01 : f32
    %283 = vector.broadcast %cst_110 : f32 to vector<8x1xf32>
    %284 = arith.divf %282, %283 : vector<8x1xf32>
    %285 = vector.broadcast %284 : vector<8x1xf32> to vector<8x32xf32>
    %286 = arith.subf %280, %285 : vector<8x32xf32>
    %287 = arith.mulf %286, %286 : vector<8x32xf32>
    %cst_111 = arith.constant dense<0.000000e+00> : vector<8xf32>
    %288 = vector.multi_reduction <add>, %287, %cst_111 [1] : vector<8x32xf32> to vector<8xf32>
    %289 = vector.shape_cast %288 : vector<8xf32> to vector<8x1xf32>
    %cst_112 = arith.constant 3.200000e+01 : f32
    %290 = vector.broadcast %cst_112 : f32 to vector<8x1xf32>
    %291 = arith.divf %289, %290 : vector<8x1xf32>
    %292 = vector.broadcast %284 : vector<8x1xf32> to vector<8x32xf32>
    %293 = arith.subf %280, %292 : vector<8x32xf32>
    %cst_113 = arith.constant 9.99999974E-6 : f32
    %294 = vector.broadcast %cst_113 : f32 to vector<8x1xf32>
    %295 = arith.addf %291, %294 : vector<8x1xf32>
    %296 = math.rsqrt %295 : vector<8x1xf32>
    %297 = vector.broadcast %296 : vector<8x1xf32> to vector<8x32xf32>
    %298 = arith.mulf %293, %297 : vector<8x32xf32>
    %299 = vector.broadcast %22 : vector<1x32xf32> to vector<8x32xf32>
    %300 = arith.mulf %298, %299 : vector<8x32xf32>
    %301 = vector.broadcast %23 : vector<1x32xf32> to vector<8x32xf32>
    %302 = arith.addf %300, %301 : vector<8x32xf32>
    %cst_114 = arith.constant dense<0.000000e+00> : vector<8xf32>
    %303 = vector.multi_reduction <add>, %302, %cst_114 [1] : vector<8x32xf32> to vector<8xf32>
    %304 = vector.shape_cast %303 : vector<8xf32> to vector<8x1xf32>
    %cst_115 = arith.constant 3.200000e+01 : f32
    %305 = vector.broadcast %cst_115 : f32 to vector<8x1xf32>
    %306 = arith.divf %304, %305 : vector<8x1xf32>
    %307 = vector.broadcast %306 : vector<8x1xf32> to vector<8x32xf32>
    %308 = arith.subf %302, %307 : vector<8x32xf32>
    %309 = arith.mulf %308, %308 : vector<8x32xf32>
    %cst_116 = arith.constant dense<0.000000e+00> : vector<8xf32>
    %310 = vector.multi_reduction <add>, %309, %cst_116 [1] : vector<8x32xf32> to vector<8xf32>
    %311 = vector.shape_cast %310 : vector<8xf32> to vector<8x1xf32>
    %cst_117 = arith.constant 3.200000e+01 : f32
    %312 = vector.broadcast %cst_117 : f32 to vector<8x1xf32>
    %313 = arith.divf %311, %312 : vector<8x1xf32>
    %314 = vector.broadcast %306 : vector<8x1xf32> to vector<8x32xf32>
    %315 = arith.subf %302, %314 : vector<8x32xf32>
    %cst_118 = arith.constant 9.99999974E-6 : f32
    %316 = vector.broadcast %cst_118 : f32 to vector<8x1xf32>
    %317 = arith.addf %313, %316 : vector<8x1xf32>
    %318 = math.rsqrt %317 : vector<8x1xf32>
    %319 = vector.broadcast %318 : vector<8x1xf32> to vector<8x32xf32>
    %320 = arith.mulf %315, %319 : vector<8x32xf32>
    %321 = vector.broadcast %28 : vector<1x32xf32> to vector<8x32xf32>
    %322 = arith.mulf %320, %321 : vector<8x32xf32>
    %323 = vector.broadcast %29 : vector<1x32xf32> to vector<8x32xf32>
    %324 = arith.addf %322, %323 : vector<8x32xf32>
    %c0_119 = arith.constant 0 : index
    %c0_120 = arith.constant 0 : index
    %c0_121 = arith.constant 0 : index
    %325 = vector.load %arg35[%c0_119, %c0_120, %c0_121] : memref<1x8x32xf32, #tpu.memory_space<vmem>>, vector<1x8x32xf32>
    %326 = vector.shape_cast %325 : vector<1x8x32xf32> to vector<8x32xf32>
    %327 = vector.shape_cast %324 : vector<8x32xf32> to vector<1x8x32xf32>
    tpu.vector_store %arg35[%c0_119, %c0_120, %c0_121], %327 {strides = array<i32>} : memref<1x8x32xf32, #tpu.memory_space<vmem>>, vector<1x8x32xf32>,
    return
  }
  func.func @transform_0(%arg0: i32) -> (i32, i32, i32) {
    %c0_i32 = arith.constant 0 : i32
    %c0_i32_0 = arith.constant 0 : i32
    %c0_i32_1 = arith.constant 0 : i32
    return %arg0, %c0_i32, %c0_i32_0 : i32, i32, i32
  }
  func.func @transform_1(%arg0: i32) -> (i32, i32, i32) {
    %c0_i32 = arith.constant 0 : i32
    %c0_i32_0 = arith.constant 0 : i32
    %c0_i32_1 = arith.constant 0 : i32
    return %arg0, %c0_i32, %c0_i32_0 : i32, i32, i32
  }
  func.func @transform_2(%arg0: i32) -> (i32, i32) {
    %c0_i32 = arith.constant 0 : i32
    %c0_i32_0 = arith.constant 0 : i32
    %c0_i32_1 = arith.constant 0 : i32
    return %c0_i32, %c0_i32_0 : i32, i32
  }
  func.func @transform_3(%arg0: i32) -> (i32, i32) {
    %c0_i32 = arith.constant 0 : i32
    %c0_i32_0 = arith.constant 0 : i32
    %c0_i32_1 = arith.constant 0 : i32
    return %c0_i32, %c0_i32_0 : i32, i32
  }
  func.func @transform_4(%arg0: i32) -> (i32, i32) {
    %c0_i32 = arith.constant 0 : i32
    %c0_i32_0 = arith.constant 0 : i32
    %c0_i32_1 = arith.constant 0 : i32
    return %c0_i32, %c0_i32_0 : i32, i32
  }
  func.func @transform_5(%arg0: i32) -> (i32, i32) {
    %c0_i32 = arith.constant 0 : i32
    %c0_i32_0 = arith.constant 0 : i32
    %c0_i32_1 = arith.constant 0 : i32
    return %c0_i32, %c0_i32_0 : i32, i32
  }
  func.func @transform_6(%arg0: i32) -> (i32, i32) {
    %c0_i32 = arith.constant 0 : i32
    %c0_i32_0 = arith.constant 0 : i32
    %c0_i32_1 = arith.constant 0 : i32
    return %c0_i32, %c0_i32_0 : i32, i32
  }
  func.func @transform_7(%arg0: i32) -> (i32, i32) {
    %c0_i32 = arith.constant 0 : i32
    %c0_i32_0 = arith.constant 0 : i32
    %c0_i32_1 = arith.constant 0 : i32
    return %c0_i32, %c0_i32_0 : i32, i32
  }
  func.func @transform_8(%arg0: i32) -> (i32, i32) {
    %c0_i32 = arith.constant 0 : i32
    %c0_i32_0 = arith.constant 0 : i32
    %c0_i32_1 = arith.constant 0 : i32
    return %c0_i32, %c0_i32_0 : i32, i32
  }
  func.func @transform_9(%arg0: i32) -> (i32, i32) {
    %c0_i32 = arith.constant 0 : i32
    %c0_i32_0 = arith.constant 0 : i32
    %c0_i32_1 = arith.constant 0 : i32
    return %c0_i32, %c0_i32_0 : i32, i32
  }
  func.func @transform_10(%arg0: i32) -> (i32, i32) {
    %c0_i32 = arith.constant 0 : i32
    %c0_i32_0 = arith.constant 0 : i32
    %c0_i32_1 = arith.constant 0 : i32
    return %c0_i32, %c0_i32_0 : i32, i32
  }
  func.func @transform_11(%arg0: i32) -> (i32, i32) {
    %c0_i32 = arith.constant 0 : i32
    %c0_i32_0 = arith.constant 0 : i32
    %c0_i32_1 = arith.constant 0 : i32
    return %c0_i32, %c0_i32_0 : i32, i32
  }
  func.func @transform_12(%arg0: i32) -> (i32, i32) {
    %c0_i32 = arith.constant 0 : i32
    %c0_i32_0 = arith.constant 0 : i32
    %c0_i32_1 = arith.constant 0 : i32
    return %c0_i32, %c0_i32_0 : i32, i32
  }
  func.func @transform_13(%arg0: i32) -> (i32, i32) {
    %c0_i32 = arith.constant 0 : i32
    %c0_i32_0 = arith.constant 0 : i32
    %c0_i32_1 = arith.constant 0 : i32
    return %c0_i32, %c0_i32_0 : i32, i32
  }
  func.func @transform_14(%arg0: i32) -> (i32, i32) {
    %c0_i32 = arith.constant 0 : i32
    %c0_i32_0 = arith.constant 0 : i32
    %c0_i32_1 = arith.constant 0 : i32
    return %c0_i32, %c0_i32_0 : i32, i32
  }
  func.func @transform_15(%arg0: i32) -> (i32, i32) {
    %c0_i32 = arith.constant 0 : i32
    %c0_i32_0 = arith.constant 0 : i32
    %c0_i32_1 = arith.constant 0 : i32
    return %c0_i32, %c0_i32_0 : i32, i32
  }
  func.func @transform_16(%arg0: i32) -> (i32, i32) {
    %c0_i32 = arith.constant 0 : i32
    %c0_i32_0 = arith.constant 0 : i32
    %c0_i32_1 = arith.constant 0 : i32
    return %c0_i32, %c0_i32_0 : i32, i32
  }
  func.func @transform_17(%arg0: i32) -> (i32, i32) {
    %c0_i32 = arith.constant 0 : i32
    %c0_i32_0 = arith.constant 0 : i32
    %c0_i32_1 = arith.constant 0 : i32
    return %c0_i32, %c0_i32_0 : i32, i32
  }
  func.func @transform_18(%arg0: i32) -> (i32, i32) {
    %c0_i32 = arith.constant 0 : i32
    %c0_i32_0 = arith.constant 0 : i32
    %c0_i32_1 = arith.constant 0 : i32
    return %c0_i32, %c0_i32_0 : i32, i32
  }
  func.func @transform_19(%arg0: i32) -> (i32, i32) {
    %c0_i32 = arith.constant 0 : i32
    %c0_i32_0 = arith.constant 0 : i32
    %c0_i32_1 = arith.constant 0 : i32
    return %c0_i32, %c0_i32_0 : i32, i32
  }
  func.func @transform_20(%arg0: i32) -> (i32, i32) {
    %c0_i32 = arith.constant 0 : i32
    %c0_i32_0 = arith.constant 0 : i32
    %c0_i32_1 = arith.constant 0 : i32
    return %c0_i32, %c0_i32_0 : i32, i32
  }
  func.func @transform_21(%arg0: i32) -> (i32, i32) {
    %c0_i32 = arith.constant 0 : i32
    %c0_i32_0 = arith.constant 0 : i32
    %c0_i32_1 = arith.constant 0 : i32
    return %c0_i32, %c0_i32_0 : i32, i32
  }
  func.func @transform_22(%arg0: i32) -> (i32, i32) {
    %c0_i32 = arith.constant 0 : i32
    %c0_i32_0 = arith.constant 0 : i32
    %c0_i32_1 = arith.constant 0 : i32
    return %c0_i32, %c0_i32_0 : i32, i32
  }
  func.func @transform_23(%arg0: i32) -> (i32, i32) {
    %c0_i32 = arith.constant 0 : i32
    %c0_i32_0 = arith.constant 0 : i32
    %c0_i32_1 = arith.constant 0 : i32
    return %c0_i32, %c0_i32_0 : i32, i32
  }
  func.func @transform_24(%arg0: i32) -> (i32, i32) {
    %c0_i32 = arith.constant 0 : i32
    %c0_i32_0 = arith.constant 0 : i32
    %c0_i32_1 = arith.constant 0 : i32
    return %c0_i32, %c0_i32_0 : i32, i32
  }
  func.func @transform_25(%arg0: i32) -> (i32, i32) {
    %c0_i32 = arith.constant 0 : i32
    %c0_i32_0 = arith.constant 0 : i32
    %c0_i32_1 = arith.constant 0 : i32
    return %c0_i32, %c0_i32_0 : i32, i32
  }
  func.func @transform_26(%arg0: i32) -> (i32, i32) {
    %c0_i32 = arith.constant 0 : i32
    %c0_i32_0 = arith.constant 0 : i32
    %c0_i32_1 = arith.constant 0 : i32
    return %c0_i32, %c0_i32_0 : i32, i32
  }
  func.func @transform_27(%arg0: i32) -> (i32, i32) {
    %c0_i32 = arith.constant 0 : i32
    %c0_i32_0 = arith.constant 0 : i32
    %c0_i32_1 = arith.constant 0 : i32
    return %c0_i32, %c0_i32_0 : i32, i32
  }
  func.func @transform_28(%arg0: i32) -> (i32, i32) {
    %c0_i32 = arith.constant 0 : i32
    %c0_i32_0 = arith.constant 0 : i32
    %c0_i32_1 = arith.constant 0 : i32
    return %c0_i32, %c0_i32_0 : i32, i32
  }
  func.func @transform_29(%arg0: i32) -> (i32, i32) {
    %c0_i32 = arith.constant 0 : i32
    %c0_i32_0 = arith.constant 0 : i32
    %c0_i32_1 = arith.constant 0 : i32
    return %c0_i32, %c0_i32_0 : i32, i32
  }
  func.func @transform_30(%arg0: i32) -> (i32, i32) {
    %c0_i32 = arith.constant 0 : i32
    %c0_i32_0 = arith.constant 0 : i32
    %c0_i32_1 = arith.constant 0 : i32
    return %c0_i32, %c0_i32_0 : i32, i32
  }
  func.func @transform_31(%arg0: i32) -> (i32, i32) {
    %c0_i32 = arith.constant 0 : i32
    %c0_i32_0 = arith.constant 0 : i32
    %c0_i32_1 = arith.constant 0 : i32
    return %c0_i32, %c0_i32_0 : i32, i32
  }
  func.func @transform_32(%arg0: i32) -> (i32, i32) {
    %c0_i32 = arith.constant 0 : i32
    %c0_i32_0 = arith.constant 0 : i32
    %c0_i32_1 = arith.constant 0 : i32
    return %c0_i32, %c0_i32_0 : i32, i32
  }
  func.func @transform_33(%arg0: i32) -> (i32, i32) {
    %c0_i32 = arith.constant 0 : i32
    %c0_i32_0 = arith.constant 0 : i32
    %c0_i32_1 = arith.constant 0 : i32
    return %c0_i32, %c0_i32_0 : i32, i32
  }
  func.func @transform_34(%arg0: i32) -> (i32, i32, i32) {
    %c0_i32 = arith.constant 0 : i32
    %c0_i32_0 = arith.constant 0 : i32
    %c0_i32_1 = arith.constant 0 : i32
    return %arg0, %c0_i32, %c0_i32_0 : i32, i32, i32
  }
}

</mosaic_0001>

<bundles_post_ra>
// kernel: informer_encoder_forward.1
= control target key start
LH: loop header
LB: loop body
LE: loop exit
PB: predicated region body
PF: predicated region fallthrough
CT: control target
= control target key end

     0   :  { %s2955_s6 = smov 1   ;;  %s2956_s10 = smov 2   ;;  %s3592_s0 = inlined_call_operand.smem [shape: u32[35], index: -1, kind: input, shape index: {}] }
   0x1   :  { %s3009_s5 = sld [smem:[%s3592_s0]]   ;;  %s2957_s14 = smov 3  }
   0x2   :  { %s3014_s9 = sld [smem:[%s3592_s0 + %s2955_s6]]   ;;  %s2958_s18 = smov 4  }
   0x3   :  { %s3019_s13 = sld [smem:[%s3592_s0 + %s2956_s10]]   ;;  %s2959_s22 = smov 5  }
   0x4   :  { %s3024_s17 = sld [smem:[%s3592_s0 + %s2957_s14]]   ;;  %s2960_s26 = smov 6  }
   0x5   :  { %s3029_s21 = sld [smem:[%s3592_s0 + %s2958_s18]]   ;;  %s2961_s30 = smov 7  }
   0x6   :  { %s3034_s25 = sld [smem:[%s3592_s0 + %s2959_s22]]   ;;  %s2962_s4 = smov 8  }
   0x7   :  { %3611 = sst [smem:[#allocation5_spill]] %s3009_s5  ;;  %s2963_s10 = smov 9  }
   0x8   :  { %3612 = sst [smem:[#allocation6_spill]] %s3014_s9  ;;  %s2964_s15 = smov 10  }
   0x9   :  { %s3039_s29 = sld [smem:[%s3592_s0 + %s2960_s26]]   ;;  %s2965_s20 = smov 11  }
   0xa   :  { %s3044_s3 = sld [smem:[%s3592_s0 + %s2961_s30]]   ;;  %s2966_s26 = smov 12  }
   0xb   :  { %s3049_s8 = sld [smem:[%s3592_s0 + %s2962_s4]]   ;;  %s2967_s1 = smov 13  }
   0xc   :  { %s3054_s14 = sld [smem:[%s3592_s0 + %s2963_s10]]   ;;  %s2968_s7 = smov 14  }
   0xd   :  { %s3059_s19 = sld [smem:[%s3592_s0 + %s2964_s15]]   ;;  %s2969_s15 = smov 15  }
   0xe   :  { %s3064_s24 = sld [smem:[%s3592_s0 + %s2965_s20]]   ;;  %s2970_s22 = smov 16  }
   0xf   :  { %s3069_s30 = sld [smem:[%s3592_s0 + %s2966_s26]]   ;;  %s2971_s28 = smov 17  }
  0x10   :  { %3613 = sst [smem:[#allocation7_spill]] %s3044_s3 }
  0x11   :  { %3614 = sst [smem:[#allocation8_spill]] %s3049_s8 }
  0x12   :  { %s3074_s6 = sld [smem:[%s3592_s0 + %s2967_s1]]  }
  0x13   :  { %s3079_s12 = sld [smem:[%s3592_s0 + %s2968_s7]]   ;;  %s2972_s7 = smov 18  }
  0x14   :  { %s3084_s20 = sld [smem:[%s3592_s0 + %s2969_s15]]   ;;  %s2973_s15 = smov 19  }
  0x15   :  { %s3089_s27 = sld [smem:[%s3592_s0 + %s2970_s22]]   ;;  %s2974_s22 = smov 20  }
  0x16   :  { %s3094_s4 = sld [smem:[%s3592_s0 + %s2971_s28]]   ;;  %s2975_s28 = smov 21  }
  0x18   :  { %3615 = sst [smem:[#allocation9_spill]] %s3074_s6 }
  0x19   :  { %3616 = sst [smem:[#allocation10_spill]] %s3079_s12 }
  0x1a   :  { %3617 = sst [smem:[#allocation11_spill]] %s3084_s20 }
  0x1b   :  { %3618 = sst [smem:[#allocation12_spill]] %s3089_s27 }
  0x1c   :  { %3619 = sst [smem:[#allocation13_spill]] %s3094_s4 }
  0x1d   :  { %s3099_s12 = sld [smem:[%s3592_s0 + %s2972_s7]]   ;;  %s2976_s7 = smov 22  }
  0x1e   :  { %s3104_s20 = sld [smem:[%s3592_s0 + %s2973_s15]]   ;;  %s2977_s15 = smov 23  }
  0x1f   :  { %s3109_s27 = sld [smem:[%s3592_s0 + %s2974_s22]]   ;;  %s2978_s22 = smov 24  }
  0x20   :  { %s3114_s4 = sld [smem:[%s3592_s0 + %s2975_s28]]   ;;  %s2979_s28 = smov 25  }
  0x23   :  { %3620 = sst [smem:[#allocation14_spill]] %s3099_s12 }
  0x24   :  { %3621 = sst [smem:[#allocation15_spill]] %s3104_s20 }
  0x25   :  { %3622 = sst [smem:[#allocation16_spill]] %s3109_s27 }
  0x26   :  { %3623 = sst [smem:[#allocation17_spill]] %s3114_s4 }
  0x27   :  { %s3119_s12 = sld [smem:[%s3592_s0 + %s2976_s7]]   ;;  %s2980_s7 = smov 26  }
  0x28   :  { %s3124_s20 = sld [smem:[%s3592_s0 + %s2977_s15]]   ;;  %s2981_s15 = smov 27  }
  0x29   :  { %s3129_s27 = sld [smem:[%s3592_s0 + %s2978_s22]]   ;;  %s2982_s22 = smov 28  }
  0x2a   :  { %s3134_s4 = sld [smem:[%s3592_s0 + %s2979_s28]]   ;;  %s2983_s28 = smov 29  }
  0x2d   :  { %3624 = sst [smem:[#allocation18_spill]] %s3119_s12 }
  0x2e   :  { %3625 = sst [smem:[#allocation19_spill]] %s3124_s20 }
  0x2f   :  { %3626 = sst [smem:[#allocation20_spill]] %s3129_s27 }
  0x30   :  { %3627 = sst [smem:[#allocation21_spill]] %s3134_s4 }
  0x31   :  { %s3139_s12 = sld [smem:[%s3592_s0 + %s2980_s7]]   ;;  %s2984_s7 = smov 30  }
  0x32   :  { %s3144_s20 = sld [smem:[%s3592_s0 + %s2981_s15]]   ;;  %s2985_s15 = smov 31  }
  0x33   :  { %s3149_s27 = sld [smem:[%s3592_s0 + %s2982_s22]]   ;;  %s2986_s22 = smov 32  }
  0x34   :  { %s3154_s4 = sld [smem:[%s3592_s0 + %s2983_s28]]   ;;  %s2987_s28 = smov 33  }
  0x37   :  { %3628 = sst [smem:[#allocation22_spill]] %s3139_s12 }
  0x38   :  { %3629 = sst [smem:[#allocation23_spill]] %s3144_s20 }
  0x39   :  { %3630 = sst [smem:[#allocation24_spill]] %s3149_s27 }
  0x3a   :  { %3631 = sst [smem:[#allocation25_spill]] %s3154_s4 }
  0x3b   :  { %s3159_s12 = sld [smem:[%s3592_s0 + %s2984_s7]]   ;;  %s2988_s7 = smov 34  }
  0x3c   :  { %s3164_s20 = sld [smem:[%s3592_s0 + %s2985_s15]]  }
  0x3d   :  { %s3169_s27 = sld [smem:[%s3592_s0 + %s2986_s22]]  }
  0x3e   :  { %s3174_s4 = sld [smem:[%s3592_s0 + %s2987_s28]]  }
  0x41   :  { %3632 = sst [smem:[#allocation26_spill]] %s3159_s12 }
  0x42   :  { %s3179_s12 = sld [smem:[%s3592_s0 + %s2988_s7]]  }
  0x43   :  { %74 = vsyncpa [#allocation3], 0 }
  0x44   :  { %76 = vsyncpa [#allocation3 + $0x1], 0  ;;  %s3181_s15 = smov 0   ;;  %s3183_s16 = smov 0  }
  0x45   :  { %s3185_s18 = smov 0   ;;  %s3187_s22 = smov 0  }
  0x46 LB: > { %3633 = sst [smem:[#allocation27_spill]] %s2949_s18  ;;  %s3202_s0 = sadd.s32 4294967295, %s2953_s22   ;;  %s2953_s22 = sphi %s3187_s22, %s3666_s22   ;;  %s2949_s18 = sphi %s3185_s18, %s3668_s18   ;;  %s2945_s16 = sphi %s3183_s16, %s3670_s16   ;;  %s2941_s15 = sphi %s3181_s15, %s3669_s15  }
  0x47   : > { %s2621_s23 = sadd.s32 4294967294, %s2953_s22   ;;  %s3206_s26 = sadd.s32 1, %s2953_s22  }
  0x48   : > { %3634 = sst [smem:[#allocation28_spill]] %s3206_s26  ;;  %s813_s28 = sadd.s32 1, %s2949_s18 }
  0x49   : > { %s810_s1 = ssub.s32 %s2953_s22, %s3206_s26  ;;  %p823_p0 = scmp.ne.s32.totalorder %s2949_s18, %s2945_s16 }
  0x4a   : > { %p811_p1 = scmp.eq.s32.totalorder %s810_s1, 0  ;;  %p824_p2 = scmp.eq.s32.totalorder %s3202_s0, 1 }
  0x4b   : > { %p829_p3 = scmp.ne.s32.totalorder %s2945_s16, %s2941_s15  ;;  %p830_p4 = scmp.eq.s32.totalorder %s2621_s23, 1 }
  0x4c   : > { %s3217_s2 = scalar_select %p811_p1, %s2949_s18, %s813_s28  }
  0x4d   : > { %p3219_p5 = por %p824_p2, %p823_p0  ;;  %p3223_p6 = por %p830_p4, %p829_p3 }
  0x4e   : > { %3635 = sst [smem:[#allocation29_spill]] %s3217_s2  ;;  %p2624_p7 = scmp.ge.s32.totalorder %s2953_s22, 1 }
  0x4f   : > { %p960_p8 = scmp.lt.s32.totalorder %s2953_s22, 3 }
  0x51   : > { %p961_p9 = pnand %p2624_p7, %p960_p8 }
  0x52   : > { %s3638_s9 = sld [smem:[#allocation6_spill]] (!%p961_p9)  ;;  %p1051_p10 = scmp.lt.s32.totalorder (!%p961_p9), %s3202_s0, 1 }
  0x53   : > { %964 = sbr.rel (%p961_p9) target bundleno = 4806 (0x12c6), region = 156  ;;  %s3639_s5 = sld [smem:[#allocation5_spill]] (!%p961_p9) }
  0x54   : > { %s2989_s2 = smov (!%p961_p9), 12   ;;  %s2990_s18 = smov (!%p961_p9), 4  }
  0x55   : > { %s3605_s26 = smov (!%p961_p9), 8   ;;  %s3640_s3 = sld [smem:[#allocation7_spill]] (!%p961_p9) }
  0x56   : > { %s3641_s8 = sld [smem:[#allocation8_spill]] (!%p961_p9) }
  0x57   : > { %s3642_s6 = sld [smem:[#allocation9_spill]] (!%p961_p9) }
  0x58   : > { %s1052_s11 = scalar_select %p1051_p10, %s3202_s0, 1  ;;  %vm1148_vm0 = vcmask 1046528   ;;  %vm1142_vm1 = vcmask 1040384   ;;  %v1186_v11 = vld [vmem:[%s3019_s13 + $0x8] sm:$0xff]  ;;  %v1185_v13 = vld [vmem:[%s3019_s13] sm:$0xff]  ;;  %v1064_v14 = vld [vmem:[%s3029_s21 + $0x18] sm:$0xff] }
  0x59   : > { %1210 = vmatpush.msra.mxu0 %v1186_v11  ;;  %2690 = vmatpush.msra.mxu1 %v1186_v11  ;;  %v1063_v15 = vld [vmem:[%s3029_s21 + $0x10] sm:$0xff]  ;;  %vm1176_vm2 = vcmask 31744   ;;  %vm1179_vm3 = vcmask 64512   ;;  %vm1182_vm4 = vcmask 97280   ;;  %vm1189_vm5 = vcmask 130048   ;;  %v1062_v28 = vld [vmem:[%s3029_s21 + $0x8] sm:$0xff] }
  0x5a   : > { %s2688_s23 = sshll.u32 %s1052_s11, 4  ;;  %v1061_v29 = vld [vmem:[%s3029_s21] sm:$0xff]  ;;  %vm1222_vm6 = vcmask 261120   ;;  %v1188_v33 = vld [vmem:[%s3024_s17 + $0x8] sm:$0xff]  ;;  %s2994_s11 = smov 104   ;;  %vm1670_vm7 = vcmask 195584  }
  0x5b   : > { %s1060_s28 = scalar_lea.vmem %s3638_s9, %s2688_s23  ;;  %s1055_s1 = scalar_lea.vmem %s3639_s5, %s2688_s23  ;;  %1211 = vmatpush.msra.mxu0 %v1185_v13  ;;  %2691 = vmatpush.msra.mxu1 %v1185_v13  ;;  %v1187_v30 = vld [vmem:[%s3024_s17] sm:$0xff]  ;;  %vm1805_vm15 = vcmask 523264  }
  0x5c   : > { %v1136_v0 = vld [vmem:[%s1060_s28] sm:$0xff]  ;;  %v1135_v2 = vld [vmem:[%s1055_s1 + $0x8] sm:$0xff]  ;;  %s3601_s23 = smov 96  }
  0x5d   : > { %v1134_v1 = vld [vmem:[%s1055_s1] sm:$0xff]  ;;  %1170 = vrot.lane.b32.xlu1 %v1136_v0, %s2989_s2  ;;  %v1150_v4 = vrot.slane %v1135_v2, 1  ;;  %v1137_v7 = vld [vmem:[%s1060_s28 + $0x8] sm:$0xff]  ;;  %v1139_v9 = vrot.slane %v1135_v2, 7  ;;  %1241 = vmatpush.msrb.mxu1 %v1064_v14  ;;  %s3607_s28 = smov 64   ;;  %s3604_s1 = smov 16  }
  0x5e   : > { %1155 = vrot.lane.b32.xlu0 %v1134_v1, %s2990_s18  ;;  %v1149_v3 = vrot.slane %v1134_v1, 1  ;;  %v1143_v8 = vrot.slane %v1134_v1, 7  ;;  %v2802_v36 = vld [vmem:[%s3034_s25] ss:$0 sm:$0xff] }
  0x5f   : > { %1242 = vmatpush.msrb.mxu1 %v1063_v15 }
  0x60   : > { %v1154_v5 = vsel %vm1148_vm0, %v1150_v4, %v1149_v3  ;;  %v1151_v6 = vsel %vm1148_vm0, %v1149_v3, %v1150_v4  ;;  %v1147_v10 = vsel %vm1142_vm1, %v1139_v9, %v1143_v8  ;;  %v1144_v12 = vsel %vm1142_vm1, %v1143_v8, %v1139_v9 }
  0x61   : > { %1164 = vrot.lane.b32.xlu2 %v1154_v5, %s3605_s26  ;;  %1243 = vmatpush.msrb.mxu1 %v1062_v28 }
  0x63   : > { %1244 = vmatpush.msrb.mxu1 %v1061_v29 }
  0x65   : > { %1157 = vrot.lane.b32.xlu1 %v1135_v2, %s2990_s18  ;;  %s3606_s18 = smov 120  }
  0x66   : > { %1162 = vrot.lane.b32.xlu0 %v1151_v6, %s3605_s26 }
  0x69   : > { %1172 = vrot.lane.b32.xlu2 %v1137_v7, %s2989_s2  ;;  %s2993_s2 = smov 112  }
  0xbb   : > { %v1165_v16 = vpop.permute.xlu2 %1164 }
  0xc3   : > { %v1173_v19 = vpop.permute.xlu2 %1172 }
  0xcf   : > { %v1171_v17 = vpop.permute.xlu1 %1170 }
  0xd0   : > { %v1156_v18 = vpop.permute.xlu0 %1155 }
  0xd1   : > { %v1177_v20 = vsel %vm1176_vm2, %v1147_v10, %v1156_v18 }
  0xd7   : > { %v1158_v21 = vpop.permute.xlu1 %1157 }
  0xd8   : > { %v1163_v22 = vpop.permute.xlu0 %1162  ;;  %v1178_v23 = vsel %vm1176_vm2, %v1144_v12, %v1158_v21 }
  0xd9   : > { %v1180_v24 = vsel %vm1179_vm3, %v1177_v20, %v1163_v22  ;;  %v1181_v26 = vsel %vm1179_vm3, %v1178_v23, %v1165_v16 }
  0xda   : > { %v1183_v25 = vsel %vm1182_vm4, %v1180_v24, %v1171_v17  ;;  %v1184_v27 = vsel %vm1182_vm4, %v1181_v26, %v1173_v19 }
  0xdb   : > { %2630 = vmatmul.msk.f32.vlgmr.msra.gmra.mxu0 %vm1189_vm5, %v1183_v25  ;;  %2631 = vmatmul.msk.f32.vlgmr.msra.gmra.mxu1 %vm1189_vm5, %v1184_v27 }
 0x158   : > { %v1213_v31 = vpop.f32.mrf.mxu0  ;;  %v1216_v34 = vpop.f32.mrf.mxu1 }
 0x159   : > { %v3250_v32 = vadd.f32 %v1213_v31, %v1187_v30  ;;  %v3255_v35 = vadd.f32 %v1216_v34, %v1188_v33 }
 0x15b   : > { %2632 = vmatmul.msk.f32.vlgmr.msrb.gmra.mxu1 %vm1222_vm6, %v3250_v32 }
 0x163   : > { %2633 = vmatmul.msk.f32.gmra.mxu1 %vm1222_vm6, %v3255_v35 }
 0x1d8   : > { %v1246_v37 = vpop.f32.mrf.mxu1 }
 0x1d9   : > { %v3260_v38 = vadd.f32 %v2802_v36, %v1246_v37 }
 0x1db   : > { %1254 = vrot.lane.b32.xlu1 %v3260_v38, %s3606_s18 }
 0x1e0   : > { %v1249_v39 = vpop.f32.mrf.mxu1 }
 0x1e1   : > { %v3264_v40 = vadd.f32 %v2802_v36, %v1249_v39 }
 0x1e3   : > { %1258 = vrot.lane.b32.xlu1 %v3260_v38, %s2993_s2  ;;  %1260 = vrot.lane.b32.xlu2 %v3264_v40, %s2993_s2 }
 0x1e4   : > { %1256 = vrot.lane.b32.xlu0 %v3264_v40, %s3606_s18  ;;  %s3000_s18 = smov 32  }
 0x1eb   : > { %1262 = vrot.lane.b32.xlu2 %v3260_v38, %s2994_s11 }
 0x1ec   : > { %1264 = vrot.lane.b32.xlu0 %v3264_v40, %s2994_s11 }
 0x23d   : > { %v3276_v41 = vpop.permute.xlu2 %1260 }
 0x23e   : > { %1338 = vrot.lane.b32.xlu2 %v3276_v41, %s3601_s23 }
 0x245   : > { %v3280_v42 = vpop.permute.xlu2 %1262 }
 0x246   : > { %1371 = vrot.lane.b32.xlu2 %v3280_v42, %s3601_s23 }
 0x24d   : > { %v3284_v43 = vpop.permute.xlu1 %1254 }
 0x24e   : > { %1301 = vrot.lane.b32.xlu1 %v3284_v43, %s3601_s23 }
 0x255   : > { %v3288_v44 = vpop.permute.xlu1 %1258 }
 0x256   : > { %v3290_v45 = vpop.permute.xlu0 %1256  ;;  %1336 = vrot.lane.b32.xlu1 %v3288_v44, %s3601_s23  ;;  %v2787_v17 = vpack.i.bf16 %v3280_v42, %v3288_v44 }
 0x257   : > { %1303 = vrot.lane.b32.xlu0 %v3290_v45, %s3601_s23  ;;  %v2777_v16 = vpack.i.bf16 %v3284_v43, %v3290_v45 }
 0x25e   : > { %v1265_v46 = vpop.permute.xlu0 %1264  ;;  %1266 = vrot.lane.b32.xlu1 %v3260_v38, %s3601_s23 }
 0x25f   : > { %1373 = vrot.lane.b32.xlu0 %v1265_v46, %s3601_s23  ;;  %v2782_v15 = vpack.i.bf16 %v1265_v46, %v3276_v41 }
 0x267   : > { %1268 = vrot.lane.b32.xlu0 %v3264_v40, %s3601_s23  ;;  %s3603_s23 = smov 24  }
 0x298   : > { %v1339_v47 = vpop.permute.xlu2 %1338 }
 0x299   : > { %2642 = vmatpush.xpose.msk.msrb.mxu0 %vm1179_vm3, %v1339_v47 }
 0x2a0   : > { %v1372_v52 = vpop.permute.xlu2 %1371 }
 0x2c0   : > { %v1302_v48 = vpop.permute.xlu1 %1301 }
 0x2c8   : > { %v1337_v49 = vpop.permute.xlu1 %1336 }
 0x2c9   : > { %v1304_v50 = vpop.permute.xlu0 %1303  ;;  %2643 = vmatpush.xpose.msk.msrb.mxu0 %vm1179_vm3, %v1337_v49 }
 0x2ca   : > { %2638 = vmatpush.xpose.msk.msra.mxu3 %vm1179_vm3, %v1304_v50 }
 0x2cc   : > { %2644 = vmatmul.msk.f32.vlgmr.msrb.gmra.mxu0 %vm1179_vm3, %v3288_v44 }
 0x2ce   : > { %2639 = vmatpush.xpose.msk.msra.mxu3 %vm1179_vm3, %v1302_v48 }
 0x2d0   : > { %v1267_v54 = vpop.permute.xlu1 %1266 }
 0x2d1   : > { %2640 = vmatmul.msk.f32.vlgmr.msra.gmra.mxu3 %vm1179_vm3, %v3284_v43  ;;  %v1374_v51 = vpop.permute.xlu0 %1373 }
 0x2d2   : > { %2646 = vmatpush.xpose.msk.msra.mxu1 %vm1179_vm3, %v1374_v51 }
 0x2d4   : > { %2645 = vmatmul.msk.f32.gmra.mxu0 %vm1179_vm3, %v3276_v41 }
 0x2d6   : > { %2647 = vmatpush.xpose.msk.msra.mxu1 %vm1179_vm3, %v1372_v52 }
 0x2d9   : > { %2641 = vmatmul.msk.f32.gmra.mxu3 %vm1179_vm3, %v3290_v45  ;;  %2648 = vmatmul.msk.f32.vlgmr.msra.gmra.mxu1 %vm1179_vm3, %v3280_v42  ;;  %v1269_v53 = vpop.permute.xlu0 %1268 }
 0x2da   : > { %2634 = vmatpush.xpose.msk.msra.mxu2 %vm1179_vm3, %v1269_v53 }
 0x2de   : > { %2635 = vmatpush.xpose.msk.msra.mxu2 %vm1179_vm3, %v1267_v54 }
 0x2e1   : > { %2636 = vmatmul.msk.f32.vlgmr.msra.gmra.mxu2 %vm1179_vm3, %v3260_v38  ;;  %2649 = vmatmul.msk.f32.gmra.mxu1 %vm1179_vm3, %v1265_v46 }
 0x2e9   : > { %2637 = vmatmul.msk.f32.gmra.mxu2 %vm1179_vm3, %v3264_v40 }
 0x349   : > { %v1365_v55 = vpop.f32.mrf.mxu0 }
 0x34a   : > { %v1410_v56 = vmul.f32 0.35355338, %v1365_v55 }
 0x34c   : > { %v1426_v57 = vsel %vm1189_vm5, %v1410_v56, -inf }
 0x34d   : > { %1427 = vmax.xlane.f32.xlu0 %v1426_v57 }
 0x351   : > { %v1368_v5 = vpop.f32.mrf.mxu0 }
 0x352   : > { %v1411_v7 = vmul.f32 0.35355338, %v1368_v5 }
 0x354   : > { %v1330_v58 = vpop.f32.mrf.mxu3  ;;  %v1429_v10 = vsel %vm1189_vm5, %v1411_v7, -inf }
 0x355   : > { %v1408_v59 = vmul.f32 0.35355338, %v1330_v58 }
 0x356   : > { %v1400_v60 = vpop.f32.mrf.mxu1 }
 0x357   : > { %v1420_v61 = vsel %vm1189_vm5, %v1408_v59, -inf  ;;  %v1412_v62 = vmul.f32 0.35355338, %v1400_v60 }
 0x358   : > { %1421 = vmax.xlane.f32.xlu2 %v1420_v61 }
 0x359   : > { %v1432_v4 = vsel %vm1189_vm5, %v1412_v62, -inf }
 0x35c   : > { %v1333_v63 = vpop.f32.mrf.mxu3 }
 0x35d   : > { %v1409_v0 = vmul.f32 0.35355338, %v1333_v63 }
 0x35e   : > { %v1403_v1 = vpop.f32.mrf.mxu1 }
 0x35f   : > { %v1413_v2 = vmul.f32 0.35355338, %v1403_v1  ;;  %v1423_v3 = vsel %vm1189_vm5, %v1409_v0, -inf }
 0x360   : > { %1424 = vmax.xlane.f32.xlu1 %v1423_v3  ;;  %1433 = vmax.xlane.f32.xlu2 %v1432_v4 }
 0x361   : > { %v1435_v6 = vsel %vm1189_vm5, %v1413_v2, -inf }
 0x362   : > { %1436 = vmax.xlane.f32.xlu0 %v1435_v6 }
 0x364   : > { %v1295_v8 = vpop.f32.mrf.mxu2 }
 0x365   : > { %v3329_v9 = vmul.f32 0.35355338, %v1295_v8 }
 0x367   : > { %v1414_v11 = vsel %vm1189_vm5, %v3329_v9, -inf }
 0x368   : > { %1430 = vmax.xlane.f32.xlu2 %v1429_v10  ;;  %1415 = vmax.xlane.f32.xlu1 %v1414_v11 }
 0x36c   : > { %v1298_v12 = vpop.f32.mrf.mxu2 }
 0x36d   : > { %v1407_v13 = vmul.f32 0.35355338, %v1298_v12 }
 0x36f   : > { %v1417_v14 = vsel %vm1189_vm5, %v1407_v13, -inf }
 0x370   : > { %1418 = vmax.xlane.f32.xlu2 %v1417_v14 }
 0x376   : > { %2783 = vrot.lane.b32.xlu0 %v2782_v15, %s3607_s28 }
 0x388   : > { %2778 = vrot.lane.b32.xlu2 %v2777_v16, %s3607_s28 }
 0x390   : > { %2788 = vrot.lane.b32.xlu2 %v2787_v17, %s3607_s28 }
 0x3c0   : > { %v1428_v18 = vpop.xlane.xlu0 %1427 }
 0x3c1   : > { %v1442_v19 = vsub.f32 %v1410_v56, %v1428_v18 }
 0x3c3   : > { %v1454_v20 = vmul.f32 1.442695, %v1442_v19 }
 0x3c5   : > { %2823 = vpow2.f32 %v1454_v20 }
 0x3cb   : > { %v3343_v21 = vpop.eup %2823  ;;  %v1422_v22 = vpop.xlane.xlu2 %1421 }
 0x3cc   : > { %v1440_v23 = vsub.f32 %v1408_v59, %v1422_v22  ;;  %v1474_v24 = vsel %vm1189_vm5, %v3343_v21, 0.0 }
 0x3cd   : > { %1475 = vadd.xlane.f32.xlu1 %v1474_v24 }
 0x3ce   : > { %v1450_v25 = vmul.f32 1.442695, %v1440_v23 }
 0x3d0   : > { %2825 = vpow2.f32 %v1450_v25 }
 0x3d3   : > { %v1425_v26 = vpop.xlane.xlu1 %1424  ;;  %v1434_v27 = vpop.xlane.xlu2 %1433 }
 0x3d4   : > { %v1441_v28 = vsub.f32 %v1409_v0, %v1425_v26  ;;  %v1444_v29 = vsub.f32 %v1412_v62, %v1434_v27 }
 0x3d5   : > { %v1437_v37 = vpop.xlane.xlu0 %1436 }
 0x3d6   : > { %v3347_v30 = vpop.eup %2825  ;;  %v1452_v31 = vmul.f32 1.442695, %v1441_v28  ;;  %v1458_v33 = vmul.f32 1.442695, %v1444_v29  ;;  %v1445_v44 = vsub.f32 %v1413_v2, %v1437_v37  ;;  %v2792_v2 = vpack.i.bf16 %v3260_v38, %v3264_v40 }
 0x3d7   : > { %v1468_v34 = vsel %vm1189_vm5, %v3347_v30, 0.0 }
 0x3d8   : > { %2827 = vpow2.f32 %v1452_v31  ;;  %1469 = vadd.xlane.f32.xlu0 %v1468_v34  ;;  %v1460_v47 = vmul.f32 1.442695, %v1445_v44  ;;  %v1068_v44 = vld [vmem:[%s3039_s29 + $0x10] sm:$0xff] }
 0x3d9   : > { %2829 = vpow2.f32 %v1458_v33 }
 0x3db   : > { %v1431_v36 = vpop.xlane.xlu2 %1430  ;;  %v1416_v49 = vpop.xlane.xlu1 %1415 }
 0x3dc   : > { %v1443_v39 = vsub.f32 %v1411_v7, %v1431_v36  ;;  %v1438_v53 = vsub.f32 %v3329_v9, %v1416_v49 }
 0x3de   : > { %v3351_v41 = vpop.eup %2827  ;;  %v1456_v42 = vmul.f32 1.442695, %v1443_v39  ;;  %v1446_v58 = vmul.f32 1.442695, %v1438_v53 }
 0x3df   : > { %v3353_v43 = vpop.eup %2829  ;;  %v1471_v45 = vsel %vm1189_vm5, %v3351_v41, 0.0 }
 0x3e0   : > { %2831 = vpow2.f32 %v1456_v42  ;;  %1472 = vadd.xlane.f32.xlu0 %v1471_v45  ;;  %v1480_v46 = vsel %vm1189_vm5, %v3353_v43, 0.0  ;;  %v1067_v45 = vld [vmem:[%s3039_s29 + $0x8] sm:$0xff] }
 0x3e1   : > { %1481 = vadd.xlane.f32.xlu1 %v1480_v46  ;;  %2833 = vpow2.f32 %v1460_v47  ;;  %v1066_v46 = vld [vmem:[%s3039_s29] sm:$0xff] }
 0x3e3   : > { %v1419_v48 = vpop.xlane.xlu2 %1418 }
 0x3e4   : > { %v1439_v50 = vsub.f32 %v1407_v13, %v1419_v48 }
 0x3e6   : > { %v2832_v51 = vpop.eup %2831  ;;  %v1448_v52 = vmul.f32 1.442695, %v1439_v50 }
 0x3e7   : > { %v1477_v54 = vsel %vm1189_vm5, %v2832_v51, 0.0  ;;  %v2834_v61 = vpop.eup %2833 }
 0x3e8   : > { %2835 = vpow2.f32 %v1448_v52  ;;  %v2784_v55 = vpop.permute.xlu0 %2783  ;;  %v1483_v1 = vsel %vm1189_vm5, %v2834_v61, 0.0 }
 0x3e9   : > { %1478 = vadd.xlane.f32.xlu1 %v1477_v54  ;;  %v2786_v56 = vunpack.i.h.bf16 %v2784_v55  ;;  %v2785_v57 = vunpack.i.l.bf16 %v2784_v55  ;;  %2837 = vpow2.f32 %v1446_v58 }
 0x3eb   : > { %v2779_v59 = vpop.permute.xlu2 %2778  ;;  %1598 = vmatpush.msra.mxu0 %v2785_v57  ;;  %1633 = vmatpush.msrb.mxu1 %v2786_v56 }
 0x3ec   : > { %v2780_v60 = vunpack.i.l.bf16 %v2779_v59  ;;  %v2781_v63 = vunpack.i.h.bf16 %v2779_v59 }
 0x3ee   : > { %v2836_v62 = vpop.eup %2835  ;;  %1563 = vmatpush.msrb.mxu3 %v2780_v60 }
 0x3ef   : > { %v1465_v0 = vsel %vm1189_vm5, %v2836_v62, 0.0  ;;  %v2838_v6 = vpop.eup %2837 }
 0x3f0   : > { %1466 = vadd.xlane.f32.xlu2 %v1465_v0  ;;  %1564 = vmatpush.msrb.mxu3 %v2781_v63  ;;  %v1462_v7 = vsel %vm1189_vm5, %v2838_v6, 0.0 }
 0x3f1   : > { %1484 = vadd.xlane.f32.xlu1 %v1483_v1 }
 0x3f3   : > { %v2789_v3 = vpop.permute.xlu2 %2788 }
 0x3f4   : > { %v2791_v4 = vunpack.i.h.bf16 %v2789_v3  ;;  %v2790_v5 = vunpack.i.l.bf16 %v2789_v3  ;;  %2793 = vrot.lane.b32.xlu0 %v2792_v2, %s3607_s28 }
 0x3f6   : > { %1599 = vmatpush.msra.mxu0 %v2790_v5  ;;  %1634 = vmatpush.msrb.mxu1 %v2791_v4 }
 0x3f9   : > { %1463 = vadd.xlane.f32.xlu1 %v1462_v7 }
 0x440   : > { %v1476_v8 = vpop.xlane.xlu1 %1475 }
 0x441   : > { %2839 = vrcp.f32 %v1476_v8 }
 0x447   : > { %v2840_v9 = vpop.eup %2839 }
 0x448   : > { %v1498_v10 = vmul.f32 %v2840_v9, %v3343_v21 }
 0x44a   : > { %2654 = vmatmul.msk.f32.vlgmr.msra.gmra.mxu0 %vm1189_vm5, %v1498_v10 }
 0x44b   : > { %v1470_v11 = vpop.xlane.xlu0 %1469 }
 0x44c   : > { %2841 = vrcp.f32 %v1470_v11 }
 0x452   : > { %v2842_v38 = vpop.eup %2841 }
 0x453   : > { %v1473_v40 = vpop.xlane.xlu0 %1472  ;;  %v1496_v12 = vmul.f32 %v2842_v38, %v3347_v30 }
 0x454   : > { %v1482_v13 = vpop.xlane.xlu1 %1481  ;;  %2843 = vrcp.f32 %v1473_v40 }
 0x455   : > { %2845 = vrcp.f32 %v1482_v13  ;;  %2652 = vmatmul.msk.f32.vlgmr.msrb.gmra.mxu3 %vm1189_vm5, %v1496_v12 }
 0x45a   : > { %v2844_v14 = vpop.eup %2843 }
 0x45b   : > { %v2846_v15 = vpop.eup %2845  ;;  %v1497_v16 = vmul.f32 %v2844_v14, %v3351_v41 }
 0x45c   : > { %v1500_v17 = vmul.f32 %v2846_v15, %v3353_v43  ;;  %v1479_v18 = vpop.xlane.xlu1 %1478  ;;  %v1069_v43 = vld [vmem:[%s3039_s29 + $0x18] sm:$0xff] }
 0x45d   : > { %2847 = vrcp.f32 %v1479_v18  ;;  %2653 = vmatmul.msk.f32.gmra.mxu3 %vm1189_vm5, %v1497_v16 }
 0x45e   : > { %2656 = vmatmul.msk.f32.vlgmr.msrb.gmra.mxu1 %vm1189_vm5, %v1500_v17 }
 0x463   : > { %v2848_v19 = vpop.eup %2847  ;;  %v1467_v28 = vpop.xlane.xlu2 %1466 }
 0x464   : > { %v1485_v20 = vpop.xlane.xlu1 %1484  ;;  %v1499_v21 = vmul.f32 %v2848_v19, %v2832_v51  ;;  %v1076_v19 = vld [vmem:[%s3059_s19 + $0x18] sm:$0xff] }
 0x465   : > { %2849 = vrcp.f32 %v1485_v20  ;;  %1789 = vmatpush.msra.mxu3 %v1076_v19  ;;  %v1075_v20 = vld [vmem:[%s3059_s19 + $0x10] sm:$0xff] }
 0x466   : > { %2655 = vmatmul.msk.f32.gmra.mxu0 %vm1189_vm5, %v1499_v21  ;;  %v2794_v22 = vpop.permute.xlu0 %2793  ;;  %v1074_v21 = vld [vmem:[%s3059_s19 + $0x8] sm:$0xff] }
 0x467   : > { %v2795_v23 = vunpack.i.l.bf16 %v2794_v22  ;;  %v2796_v24 = vunpack.i.h.bf16 %v2794_v22  ;;  %1790 = vmatpush.msra.mxu3 %v1075_v20  ;;  %v1073_v22 = vld [vmem:[%s3059_s19] sm:$0xff] }
 0x469   : > { %1528 = vmatpush.msrb.mxu2 %v2795_v23  ;;  %1791 = vmatpush.msra.mxu3 %v1074_v21 }
 0x46b   : > { %v2850_v25 = vpop.eup %2849  ;;  %1529 = vmatpush.msrb.mxu2 %v2796_v24  ;;  %1792 = vmatpush.msra.mxu3 %v1073_v22 }
 0x46c   : > { %v1464_v26 = vpop.xlane.xlu1 %1463  ;;  %v1501_v27 = vmul.f32 %v2850_v25, %v2834_v61  ;;  %v2803_v61 = vld [vmem:[%s3640_s3] ss:$0 sm:$0xff]  ;;  %s3663_s3 = sld [smem:[#allocation21_spill]] }
 0x46d   : > { %2851 = vrcp.f32 %v1464_v26  ;;  %1694 = vmatpush.msra.mxu2 %v1069_v43 }
 0x46e   : > { %2657 = vmatmul.msk.f32.gmra.mxu1 %vm1189_vm5, %v1501_v27  ;;  %2853 = vrcp.f32 %v1467_v28  ;;  %v1085_v28 = vld [vmem:[%s3069_s30 + $0x38] sm:$0xff] }
 0x46f   : > { %1695 = vmatpush.msra.mxu2 %v1068_v44  ;;  %1820 = vmatpush.msrb.mxu0 %v1085_v28  ;;  %v2804_v44 = vld [vmem:[%s3641_s8] ss:$0 sm:$0xff] }
 0x471   : > { %1696 = vmatpush.msra.mxu2 %v1067_v45 }
 0x473   : > { %v2852_v29 = vpop.eup %2851  ;;  %1697 = vmatpush.msra.mxu2 %v1066_v46 }
 0x474   : > { %v1494_v30 = vmul.f32 %v2852_v29, %v2838_v6  ;;  %v2854_v31 = vpop.eup %2853  ;;  %v2999_v6 = vmov 32.0   ;;  %v1084_v29 = vld [vmem:[%s3069_s30 + $0x30] sm:$0xff] }
 0x475   : > { %v1495_v33 = vmul.f32 %v2854_v31, %v2836_v62  ;;  %2855 = vrcp.f32 %v2999_v6  ;;  %v1083_v31 = vld [vmem:[%s3069_s30 + $0x28] sm:$0xff]  ;;  %1821 = vmatpush.msrb.mxu0 %v1084_v29  ;;  %v2807_v6 = vld [vmem:[%s3642_s6] ss:$0 sm:$0xff] }
 0x476   : > { %2650 = vmatmul.msk.f32.vlgmr.msrb.gmra.mxu2 %vm1189_vm5, %v1494_v30 }
 0x477   : > { %1822 = vmatpush.msrb.mxu0 %v1083_v31 }
 0x47b   : > { %v2856_v7 = vpop.eup %2855 }
 0x47c   : > { %v1714_v8 = vmul.f32 32.0, %v2856_v7  ;;  %vm1718_vm8 = vweird.f32 %v2856_v7 }
 0x47e   : > { %2651 = vmatmul.msk.f32.gmra.mxu2 %vm1189_vm5, %v1495_v33  ;;  %v1715_v9 = vsub.f32 1.0, %v1714_v8 }
 0x480   : > { %v1716_v10 = vmul.f32 %v2856_v7, %v1715_v9 }
 0x482   : > { %v1717_v11 = vadd.f32 %v2856_v7, %v1716_v10 }
 0x4c7   : > { %v1601_v34 = vpop.f32.mrf.mxu0 }
 0x4c8   : > { %1652 = vrot.lane.b32.xlu0 %v1601_v34, %s3604_s1 }
 0x4d8   : > { %v1566_v36 = vpop.f32.mrf.mxu3 }
 0x4d9   : > { %1644 = vrot.lane.b32.xlu1 %v1566_v36, %s3605_s26 }
 0x4db   : > { %v1636_v37 = vpop.f32.mrf.mxu1 }
 0x4dc   : > { %1660 = vrot.lane.b32.xlu0 %v1636_v37, %s3603_s23  ;;  %v1082_v37 = vld [vmem:[%s3069_s30 + $0x20] sm:$0xff] }
 0x4dd   : > { %1823 = vmatpush.msrb.mxu0 %v1082_v37 }
 0x4e0   : > { %v1569_v39 = vpop.f32.mrf.mxu3 }
 0x4e3   : > { %v1604_v41 = vpop.f32.mrf.mxu0 }
 0x4e4   : > { %1646 = vrot.lane.b32.xlu0 %v1569_v39, %s3605_s26  ;;  %1654 = vrot.lane.b32.xlu1 %v1604_v41, %s3604_s1  ;;  %s3644_s1 = sld [smem:[#allocation10_spill]] }
 0x4e5   : > { %s3645_s26 = sld [smem:[#allocation11_spill]] }
 0x4eb   : > { %v1639_v42 = vpop.f32.mrf.mxu1 }
 0x4ec   : > { %1662 = vrot.lane.b32.xlu0 %v1639_v42, %s3603_s23  ;;  %v1081_v42 = vld [vmem:[%s3069_s30 + $0x18] sm:$0xff]  ;;  %s3643_s23 = sld [smem:[#allocation24_spill]] }
 0x4ed   : > { %1824 = vmatpush.msrb.mxu0 %v1081_v42  ;;  %v2808_v42 = vld [vmem:[%s3644_s1] ss:$0 sm:$0xff]  ;;  %s3648_s1 = sld [smem:[#allocation12_spill]] }
 0x4f2   : > { %v1127_v31 = vld [vmem:[%s3643_s23 + $0x50] sm:$0xff] }
 0x4f9   : > { %v1531_v48 = vpop.f32.mrf.mxu2 }
 0x501   : > { %v1534_v55 = vpop.f32.mrf.mxu2 }
 0x53a   : > { %v1653_v47 = vpop.permute.xlu0 %1652 }
 0x54b   : > { %v1645_v49 = vpop.permute.xlu1 %1644 }
 0x54c   : > { %v1666_v50 = vsel %vm1179_vm3, %v1531_v48, %v1645_v49 }
 0x54d   : > { %v1668_v51 = vsel %vm1189_vm5, %v1666_v50, %v1653_v47  ;;  %v2805_v47 = vld [vmem:[%s3054_s14] ss:$0 sm:$0xff] }
 0x54e   : > { %v1661_v52 = vpop.permute.xlu0 %1660 }
 0x54f   : > { %v1671_v53 = vsel %vm1670_vm7, %v1668_v51, %v1661_v52 }
 0x550   : > { %2658 = vmatmul.msk.f32.vlgmr.msra.gmra.mxu2 %vm1222_vm6, %v1671_v53 }
 0x556   : > { %v1647_v54 = vpop.permute.xlu0 %1646  ;;  %v1655_v57 = vpop.permute.xlu1 %1654 }
 0x557   : > { %v1667_v56 = vsel %vm1179_vm3, %v1534_v55, %v1647_v54 }
 0x558   : > { %v1669_v58 = vsel %vm1189_vm5, %v1667_v56, %v1655_v57 }
 0x55e   : > { %v1663_v59 = vpop.permute.xlu0 %1662 }
 0x55f   : > { %v1672_v60 = vsel %vm1670_vm7, %v1669_v58, %v1663_v59 }
 0x560   : > { %2659 = vmatmul.msk.f32.gmra.mxu2 %vm1222_vm6, %v1672_v60  ;;  %v1080_v60 = vld [vmem:[%s3069_s30 + $0x10] sm:$0xff] }
 0x561   : > { %1825 = vmatpush.msrb.mxu0 %v1080_v60 }
 0x5d3   : > { %v1699_v62 = vpop.f32.mrf.mxu2 }
 0x5d4   : > { %v1700_v63 = vadd.f32 %v2803_v61, %v1699_v62  ;;  %v1078_v62 = vld [vmem:[%s3069_s30] sm:$0xff] }
 0x5d6   : > { %v1705_v0 = vadd.f32 %v1700_v63, %v3250_v32  ;;  %v3402_v32 = vsel %vm1718_vm8, %v2856_v7, %v1717_v11  ;;  %v2806_v63 = vld [vmem:[%s3064_s24] ss:$0 sm:$0xff] }
 0x5d8   : > { %v1707_v1 = vsel %vm1222_vm6, %v1705_v0, 0.0 }
 0x5d9   : > { %1708 = vadd.xlane.f32.xlu1 %v1707_v1 }
 0x5e3   : > { %v1702_v2 = vpop.f32.mrf.mxu2 }
 0x5e4   : > { %v1703_v3 = vadd.f32 %v2803_v61, %v1702_v2  ;;  %v1079_v61 = vld [vmem:[%s3069_s30 + $0x8] sm:$0xff] }
 0x5e5   : > { %1826 = vmatpush.msrb.mxu0 %v1079_v61 }
 0x5e6   : > { %v1706_v4 = vadd.f32 %v1703_v3, %v3255_v35 }
 0x5e7   : > { %1827 = vmatpush.msrb.mxu0 %v1078_v62 }
 0x5e8   : > { %v1710_v5 = vsel %vm1222_vm6, %v1706_v4, 0.0 }
 0x5e9   : > { %1711 = vadd.xlane.f32.xlu0 %v1710_v5 }
 0x64c   : > { %v1709_v38 = vpop.xlane.xlu1 %1708 }
 0x64d   : > { %v1720_v40 = vmul.f32 %v3402_v32, %v1709_v38 }
 0x64f   : > { %v1722_v35 = vsub.f32 %v1705_v0, %v1720_v40 }
 0x651   : > { %v1724_v12 = vmul.f32 %v1722_v35, %v1722_v35 }
 0x653   : > { %v1726_v13 = vsel %vm1222_vm6, %v1724_v12, 0.0 }
 0x654   : > { %1727 = vadd.xlane.f32.xlu2 %v1726_v13 }
 0x65c   : > { %v1712_v14 = vpop.xlane.xlu0 %1711 }
 0x65d   : > { %v1721_v15 = vmul.f32 %v3402_v32, %v1712_v14 }
 0x65f   : > { %v1723_v16 = vsub.f32 %v1706_v4, %v1721_v15 }
 0x661   : > { %v1725_v17 = vmul.f32 %v1723_v16, %v1723_v16 }
 0x663   : > { %v1729_v18 = vsel %vm1222_vm6, %v1725_v17, 0.0 }
 0x664   : > { %1730 = vadd.xlane.f32.xlu2 %v1729_v18 }
 0x6c7   : > { %v1728_v23 = vpop.xlane.xlu2 %1727 }
 0x6c8   : > { %v1732_v24 = vmul.f32 %v1728_v23, %v3402_v32 }
 0x6ca   : > { %v1734_v25 = vadd.f32 1e-05, %v1732_v24 }
 0x6cc   : > { %2857 = vrsqrt.f32 %v1734_v25  ;;  %vm1742_vm10 = vweird.f32 %v1734_v25 }
 0x6d2   : > { %v2858_v26 = vpop.eup %2857 }
 0x6d3   : > { %v1737_v27 = vmul.f32 %v2858_v26, %v1734_v25  ;;  %vm1743_vm9 = vweird.f32 %v2858_v26 }
 0x6d4   : > { %vm1744_vm11 = vmor %vm1742_vm10, %vm1743_vm9 }
 0x6d5   : > { %v1738_v30 = vmul.f32 %v2858_v26, %v1737_v27 }
 0x6d7   : > { %v1739_v33 = vmul.f32 0.5, %v1738_v30  ;;  %v1731_v34 = vpop.xlane.xlu2 %1730  ;;  %v1128_v30 = vld [vmem:[%s3643_s23 + $0x58] sm:$0xff] }
 0x6d8   : > { %v1733_v36 = vmul.f32 %v1731_v34, %v3402_v32  ;;  %1937 = vmatpush.msra.mxu1 %v1128_v30 }
 0x6d9   : > { %v1740_v39 = vsub.f32 1.5, %v1739_v33 }
 0x6da   : > { %v1735_v41 = vadd.f32 1e-05, %v1733_v36  ;;  %v1126_v36 = vld [vmem:[%s3643_s23 + $0x48] sm:$0xff]  ;;  %1938 = vmatpush.msra.mxu1 %v1127_v31 }
 0x6db   : > { %v1741_v43 = vmul.f32 %v2858_v26, %v1740_v39 }
 0x6dc   : > { %2859 = vrsqrt.f32 %v1735_v41  ;;  %vm1752_vm13 = vweird.f32 %v1735_v41  ;;  %1939 = vmatpush.msra.mxu1 %v1126_v36 }
 0x6dd   : > { %v1745_v45 = vsel %vm1744_vm11, %v2858_v26, %v1741_v43 }
 0x6de   : > { %v1756_v46 = vmul.f32 %v1745_v45, %v1722_v35 }
 0x6e0   : > { %v1761_v48 = vmul.f32 %v2804_v44, %v1756_v46  ;;  %v2809_v46 = vld [vmem:[%s3645_s26] ss:$0 sm:$0xff]  ;;  %s3646_s26 = sld [smem:[#allocation25_spill]] }
 0x6e2   : > { %v2860_v49 = vpop.eup %2859  ;;  %v1766_v50 = vadd.f32 %v2805_v47, %v1761_v48 }
 0x6e3   : > { %v1747_v51 = vmul.f32 %v2860_v49, %v1735_v41  ;;  %vm1753_vm12 = vweird.f32 %v2860_v49  ;;  %v1125_v41 = vld [vmem:[%s3643_s23 + $0x40] sm:$0xff] }
 0x6e4   : > { %2660 = vmatmul.msk.f32.vlgmr.msra.gmra.mxu3 %vm1222_vm6, %v1766_v50  ;;  %vm1754_vm14 = vmor %vm1752_vm13, %vm1753_vm12  ;;  %1940 = vmatpush.msra.mxu1 %v1125_v41  ;;  %vm1926_vm12 = vcmask 785408  }
 0x6e5   : > { %v1748_v52 = vmul.f32 %v2860_v49, %v1747_v51 }
 0x6e7   : > { %v1749_v53 = vmul.f32 0.5, %v1748_v52 }
 0x6e9   : > { %v1750_v54 = vsub.f32 1.5, %v1749_v53  ;;  %v1121_v53 = vld [vmem:[%s3643_s23 + $0x20] sm:$0xff] }
 0x6eb   : > { %v1751_v55 = vmul.f32 %v2860_v49, %v1750_v54 }
 0x6ed   : > { %v1755_v56 = vsel %vm1754_vm14, %v2860_v49, %v1751_v55  ;;  %v1122_v49 = vld [vmem:[%s3643_s23 + $0x28] sm:$0xff] }
 0x6ee   : > { %v1757_v57 = vmul.f32 %v1755_v56, %v1723_v16 }
 0x6f0   : > { %v1762_v58 = vmul.f32 %v2804_v44, %v1757_v57  ;;  %v1124_v44 = vld [vmem:[%s3643_s23 + $0x38] sm:$0xff] }
 0x6f1   : > { %1941 = vmatpush.msra.mxu1 %v1124_v44 }
 0x6f2   : > { %v1767_v59 = vadd.f32 %v2805_v47, %v1762_v58  ;;  %v1123_v47 = vld [vmem:[%s3643_s23 + $0x30] sm:$0xff] }
 0x6f3   : > { %1942 = vmatpush.msra.mxu1 %v1123_v47 }
 0x6f4   : > { %2661 = vmatmul.msk.f32.gmra.mxu3 %vm1222_vm6, %v1767_v59 }
 0x6f5   : > { %1943 = vmatpush.msra.mxu1 %v1122_v49 }
 0x6f7   : > { %1944 = vmatpush.msra.mxu1 %v1121_v53 }
 0x767   : > { %v1794_v0 = vpop.f32.mrf.mxu3 }
 0x768   : > { %v1795_v1 = vadd.f32 %v2806_v63, %v1794_v0 }
 0x76a   : > { %v1800_v2 = vmax.f32 %v1795_v1, 0.0 }
 0x76c   : > { %2662 = vmatmul.msk.f32.vlgmr.msrb.gmra.mxu0 %vm1805_vm15, %v1800_v2 }
 0x777   : > { %v1797_v3 = vpop.f32.mrf.mxu3 }
 0x778   : > { %v1798_v4 = vadd.f32 %v2806_v63, %v1797_v3 }
 0x77a   : > { %v1801_v5 = vmax.f32 %v1798_v4, 0.0 }
 0x77c   : > { %2663 = vmatmul.msk.f32.gmra.mxu0 %vm1805_vm15, %v1801_v5 }
 0x7e9   : > { %v1829_v7 = vpop.f32.mrf.mxu0 }
 0x7ea   : > { %v1830_v8 = vadd.f32 %v2807_v6, %v1829_v7  ;;  %v1119_v7 = vld [vmem:[%s3643_s23 + $0x10] sm:$0xff] }
 0x7ec   : > { %v1835_v9 = vadd.f32 %v1830_v8, %v1766_v50  ;;  %v1118_v8 = vld [vmem:[%s3643_s23 + $0x8] sm:$0xff] }
 0x7ee   : > { %v1837_v10 = vsel %vm1222_vm6, %v1835_v9, 0.0 }
 0x7ef   : > { %1838 = vadd.xlane.f32.xlu2 %v1837_v10 }
 0x7f9   : > { %v1832_v11 = vpop.f32.mrf.mxu0 }
 0x7fa   : > { %v1833_v38 = vadd.f32 %v2807_v6, %v1832_v11  ;;  %v1120_v6 = vld [vmem:[%s3643_s23 + $0x18] sm:$0xff] }
 0x7fb   : > { %1945 = vmatpush.msra.mxu1 %v1120_v6 }
 0x7fc   : > { %v1836_v40 = vadd.f32 %v1833_v38, %v1767_v59 }
 0x7fd   : > { %1946 = vmatpush.msra.mxu1 %v1119_v7 }
 0x7fe   : > { %v1840_v35 = vsel %vm1222_vm6, %v1836_v40, 0.0 }
 0x7ff   : > { %1841 = vadd.xlane.f32.xlu2 %v1840_v35  ;;  %1947 = vmatpush.msra.mxu1 %v1118_v8 }
 0x862   : > { %v1839_v12 = vpop.xlane.xlu2 %1838 }
 0x863   : > { %v1843_v13 = vmul.f32 %v1839_v12, %v3402_v32 }
 0x865   : > { %v1845_v14 = vsub.f32 %v1835_v9, %v1843_v13  ;;  %v1117_v9 = vld [vmem:[%s3643_s23] sm:$0xff] }
 0x866   : > { %1948 = vmatpush.msra.mxu1 %v1117_v9 }
 0x867   : > { %v1847_v15 = vmul.f32 %v1845_v14, %v1845_v14 }
 0x869   : > { %v1849_v16 = vsel %vm1222_vm6, %v1847_v15, 0.0  ;;  %v2810_v15 = vld [vmem:[%s3646_s26] ss:$0 sm:$0xff]  ;;  %s3649_s26 = sld [smem:[#allocation13_spill]] }
 0x86a   : > { %1850 = vadd.xlane.f32.xlu2 %v1849_v16 }
 0x86f   : > { %v2813_v6 = vld [vmem:[%s3649_s26] ss:$0 sm:$0xff]  ;;  %s3655_s26 = smov 16  }
 0x872   : > { %v1842_v17 = vpop.xlane.xlu2 %1841 }
 0x873   : > { %v1844_v18 = vmul.f32 %v1842_v17, %v3402_v32 }
 0x875   : > { %v1846_v19 = vsub.f32 %v1836_v40, %v1844_v18 }
 0x877   : > { %v1848_v20 = vmul.f32 %v1846_v19, %v1846_v19 }
 0x879   : > { %v1852_v21 = vsel %vm1222_vm6, %v1848_v20, 0.0 }
 0x87a   : > { %1853 = vadd.xlane.f32.xlu1 %v1852_v21 }
 0x8dd   : > { %v1851_v22 = vpop.xlane.xlu2 %1850 }
 0x8de   : > { %v1855_v23 = vmul.f32 %v1851_v22, %v3402_v32 }
 0x8e0   : > { %v1857_v24 = vadd.f32 1e-05, %v1855_v23  ;;  %v1092_v23 = vld [vmem:[%s3648_s1 + $0x18] sm:$0xff] }
 0x8e1   : > { %2042 = vmatpush.msrb.mxu2 %v1092_v23 }
 0x8e2   : > { %2861 = vrsqrt.f32 %v1857_v24  ;;  %vm1865_vm4 = vweird.f32 %v1857_v24 }
 0x8e8   : > { %v2862_v25 = vpop.eup %2861 }
 0x8e9   : > { %v1860_v26 = vmul.f32 %v2862_v25, %v1857_v24  ;;  %vm1866_vm2 = vweird.f32 %v2862_v25  ;;  %v1091_v24 = vld [vmem:[%s3648_s1 + $0x10] sm:$0xff] }
 0x8ea   : > { %vm1867_vm8 = vmor %vm1865_vm4, %vm1866_vm2  ;;  %2043 = vmatpush.msrb.mxu2 %v1091_v24  ;;  %vm2013_vm2 = vcmask 1041408   ;;  %vm2015_vm4 = vcmask 1042432  }
 0x8eb   : > { %v1861_v27 = vmul.f32 %v2862_v25, %v1860_v26  ;;  %v1090_v26 = vld [vmem:[%s3648_s1 + $0x8] sm:$0xff] }
 0x8ec   : > { %2044 = vmatpush.msrb.mxu2 %v1090_v26 }
 0x8ed   : > { %v1862_v28 = vmul.f32 0.5, %v1861_v27  ;;  %v1854_v29 = vpop.xlane.xlu1 %1853  ;;  %v1089_v27 = vld [vmem:[%s3648_s1] sm:$0xff]  ;;  %s3662_s1 = sld [smem:[#allocation19_spill]] }
 0x8ee   : > { %v1856_v33 = vmul.f32 %v1854_v29, %v3402_v32  ;;  %2045 = vmatpush.msrb.mxu2 %v1089_v27 }
 0x8ef   : > { %v1863_v34 = vsub.f32 1.5, %v1862_v28 }
 0x8f0   : > { %v1858_v37 = vadd.f32 1e-05, %v1856_v33 }
 0x8f1   : > { %v1864_v39 = vmul.f32 %v2862_v25, %v1863_v34 }
 0x8f2   : > { %2863 = vrsqrt.f32 %v1858_v37  ;;  %vm1875_vm10 = vweird.f32 %v1858_v37 }
 0x8f3   : > { %v1868_v43 = vsel %vm1867_vm8, %v2862_v25, %v1864_v39  ;;  %vm2017_vm8 = vcmask 1043456  }
 0x8f4   : > { %v1879_v45 = vmul.f32 %v1868_v43, %v1845_v14 }
 0x8f6   : > { %v1884_v48 = vmul.f32 %v2808_v42, %v1879_v45 }
 0x8f8   : > { %v2864_v50 = vpop.eup %2863  ;;  %v1889_v51 = vadd.f32 %v2809_v46, %v1884_v48 }
 0x8f9   : > { %v1870_v52 = vmul.f32 %v2864_v50, %v1858_v37  ;;  %vm1876_vm9 = vweird.f32 %v2864_v50 }
 0x8fa   : > { %1906 = vrot.lane.b32.xlu0 %v1889_v51, %s3000_s18  ;;  %vm1877_vm11 = vmor %vm1875_vm10, %vm1876_vm9  ;;  %v1900_v62 = vrot.slane %v1889_v51, 1  ;;  %v1895_v1 = vrot.slane %v1889_v51, 7  ;;  %vm2019_vm9 = vcmask 1044480   ;;  %vm2021_vm10 = vcmask 1045504  }
 0x8fb   : > { %v1871_v54 = vmul.f32 %v2864_v50, %v1870_v52 }
 0x8fd   : > { %v1872_v55 = vmul.f32 0.5, %v1871_v54 }
 0x8ff   : > { %v1873_v56 = vsub.f32 1.5, %v1872_v55 }
 0x901   : > { %v1874_v57 = vmul.f32 %v2864_v50, %v1873_v56 }
 0x903   : > { %v1878_v58 = vsel %vm1877_vm11, %v2864_v50, %v1874_v57 }
 0x904   : > { %v1880_v59 = vmul.f32 %v1878_v58, %v1846_v19  ;;  %v2812_v19 = vld [vmem:[%s3164_s20] ss:$0 sm:$0xff] }
 0x906   : > { %v1885_v60 = vmul.f32 %v2808_v42, %v1880_v59 }
 0x908   : > { %v1890_v61 = vadd.f32 %v2809_v46, %v1885_v60 }
 0x90a   : > { %1908 = vrot.lane.b32.xlu1 %v1890_v61, %s3000_s18  ;;  %v1901_v63 = vrot.slane %v1890_v61, 1  ;;  %v1892_v0 = vrot.slane %v1890_v61, 7  ;;  %s3647_s18 = sld [smem:[#allocation26_spill]] }
 0x90c   : > { %v1905_v2 = vsel %vm1148_vm0, %v1901_v63, %v1900_v62  ;;  %v1902_v3 = vsel %vm1148_vm0, %v1900_v62, %v1901_v63  ;;  %v1899_v4 = vsel %vm1142_vm1, %v1892_v0, %v1895_v1  ;;  %v1896_v5 = vsel %vm1142_vm1, %v1895_v1, %v1892_v0 }
 0x90d   : > { %1915 = vrot.lane.b32.xlu0 %v1905_v2, %s3607_s28  ;;  %1913 = vrot.lane.b32.xlu2 %v1902_v3, %s3607_s28  ;;  %s3651_s28 = smov 96  }
 0x910   : > { %v2811_v16 = vld [vmem:[%s3647_s18] ss:$0 sm:$0xff]  ;;  %s3650_s18 = smov 120  }
 0x967   : > { %v1914_v11 = vpop.permute.xlu2 %1913 }
 0x96c   : > { %v1907_v10 = vpop.permute.xlu0 %1906 }
 0x96d   : > { %v1919_v38 = vsel %vm1222_vm6, %v1899_v4, %v1907_v10 }
 0x96e   : > { %v1921_v40 = vsel %vm1805_vm15, %v1919_v38, %v1914_v11 }
 0x96f   : > { %2664 = vmatmul.msk.f32.vlgmr.msra.gmra.mxu1 %vm1926_vm12, %v1921_v40 }
 0x97c   : > { %v1909_v35 = vpop.permute.xlu1 %1908 }
 0x97d   : > { %v1920_v12 = vsel %vm1222_vm6, %v1896_v5, %v1909_v35 }
 0x97f   : > { %v1916_v13 = vpop.permute.xlu0 %1915 }
 0x980   : > { %v1922_v14 = vsel %vm1805_vm15, %v1920_v12, %v1916_v13 }
 0x981   : > { %2665 = vmatmul.msk.f32.gmra.mxu1 %vm1926_vm12, %v1922_v14 }
 0x9ec   : > { %v1950_v17 = vpop.f32.mrf.mxu1 }
 0x9ed   : > { %v1951_v18 = vadd.f32 %v2810_v15, %v1950_v17 }
 0x9ef   : > { %v1959_v20 = vmul.f32 %v2811_v16, %v1951_v18 }
 0x9f1   : > { %v1964_v21 = vadd.f32 %v2812_v19, %v1959_v20 }
 0x9f3   : > { %v1968_v22 = vmin.f32 %v1964_v21, 0.0  ;;  %vm1966_vm13 = vcmp.gt.f32.partialorder %v1964_v21, 0.0 }
 0x9f5   : > { %v1970_v25 = vmul.f32 1.442695, %v1968_v22 }
 0x9f7   : > { %2865 = vpow2.f32 %v1970_v25 }
 0x9fd   : > { %v2866_v31 = vpop.eup %2865 }
 0x9fe   : > { %v1953_v28 = vpop.f32.mrf.mxu1  ;;  %v2666_v36 = vadd.f32 -1.0, %v2866_v31 }
 0x9ff   : > { %v1954_v29 = vadd.f32 %v2810_v15, %v1953_v28 }
 0xa00   : > { %v1976_v39 = vsel %vm1966_vm13, %v1964_v21, %v2666_v36 }
 0xa01   : > { %v1960_v30 = vmul.f32 %v2811_v16, %v1954_v29  ;;  %v1980_v41 = vrot.slane %v1976_v39, 7  ;;  %v1986_v46 = vrot.slane %v1976_v39, 1 }
 0xa03   : > { %v1965_v33 = vadd.f32 %v2812_v19, %v1960_v30  ;;  %v1985_v44 = vsel %vm1142_vm1, -inf, %v1980_v41 }
 0xa04   : > { %v1992_v49 = vmax.f32 %v1985_v44, %v1976_v39 }
 0xa05   : > { %v1969_v34 = vmin.f32 %v1965_v33, 0.0  ;;  %vm1967_vm14 = vcmp.gt.f32.partialorder %v1965_v33, 0.0 }
 0xa07   : > { %v1972_v37 = vmul.f32 1.442695, %v1969_v34 }
 0xa09   : > { %2867 = vpow2.f32 %v1972_v37 }
 0xa0f   : > { %v2868_v42 = vpop.eup %2867 }
 0xa10   : > { %v2667_v43 = vadd.f32 -1.0, %v2868_v42 }
 0xa12   : > { %v1977_v45 = vsel %vm1967_vm14, %v1965_v33, %v2667_v43 }
 0xa13   : > { %v1981_v47 = vrot.slane %v1977_v45, 7  ;;  %v1987_v48 = vrot.slane %v1977_v45, 1 }
 0xa15   : > { %v1982_v50 = vsel %vm1142_vm1, %v1980_v41, %v1981_v47  ;;  %v1988_v51 = vsel %vm1148_vm0, %v1986_v46, %v1987_v48  ;;  %v1991_v54 = vsel %vm1148_vm0, %v1987_v48, -inf }
 0xa16   : > { %v1993_v52 = vmax.f32 %v1982_v50, %v1977_v45  ;;  %v1994_v53 = vmax.f32 %v1992_v49, %v1988_v51 }
 0xa18   : > { %v1995_v55 = vmax.f32 %v1993_v52, %v1991_v54  ;;  %v1997_v56 = vrot.slane %v1994_v53, 1  ;;  %v1999_v57 = vrot.slane %v1994_v53, 2  ;;  %v2001_v59 = vrot.slane %v1994_v53, 3 }
 0xa1a   : > { %v2004_v58 = vrot.slane %v1995_v55, 4  ;;  %v2012_v60 = vsel %vm1142_vm1, %v1994_v53, %v1997_v56  ;;  %v2006_v62 = vrot.slane %v1995_v55, 5  ;;  %v2008_v0 = vrot.slane %v1995_v55, 6 }
 0xa1b   : > { %v2014_v61 = vsel %vm2013_vm2, %v2012_v60, %v1999_v57  ;;  %v2010_v2 = vrot.slane %v1995_v55, 7 }
 0xa1c   : > { %v2016_v63 = vsel %vm2015_vm4, %v2014_v61, %v2001_v59 }
 0xa1d   : > { %v2018_v1 = vsel %vm2017_vm8, %v2016_v63, %v2004_v58 }
 0xa1e   : > { %v2020_v3 = vsel %vm2019_vm9, %v2018_v1, %v2006_v62 }
 0xa1f   : > { %v2022_v4 = vsel %vm2021_vm10, %v2020_v3, %v2008_v0 }
 0xa20   : > { %v3475_v5 = vsel %vm1148_vm0, %v2022_v4, %v2010_v2 }
 0xa21   : > { %2668 = vmatmul.msk.f32.vlgmr.msrb.gmra.mxu2 %vm1222_vm6, %v3475_v5 }
 0xaa4   : > { %v2047_v7 = vpop.f32.mrf.mxu2 }
 0xaa5   : > { %v3480_v8 = vadd.f32 %v2813_v6, %v2047_v7 }
 0xaa7   : > { %2055 = vrot.lane.b32.xlu1 %v3480_v8, %s2994_s11  ;;  %2053 = vrot.lane.b32.xlu0 %v3480_v8, %s2993_s2  ;;  %s3652_s2 = smov 64   ;;  %s3653_s11 = sld [smem:[#allocation14_spill]] }
 0xaa8   : > { %2051 = vrot.lane.b32.xlu2 %v3480_v8, %s3650_s18  ;;  %s3656_s18 = smov 24  }
 0xaad   : > { %v1097_v7 = vld [vmem:[%s3653_s11 + $0x18] sm:$0xff] }
 0xab0   : > { %2057 = vrot.lane.b32.xlu2 %v3480_v8, %s3651_s28 }
 0xb02   : > { %v2052_v9 = vpop.permute.xlu2 %2051 }
 0xb03   : > { %2083 = vrot.lane.b32.xlu0 %v2052_v9, %s3651_s28 }
 0xb0a   : > { %v2058_v10 = vpop.permute.xlu2 %2057 }
 0xb0b   : > { %2669 = vmatpush.xpose.msk.msrb.mxu3 %vm1179_vm3, %v2058_v10  ;;  %v1094_v10 = vld [vmem:[%s3653_s11] sm:$0xff] }
 0xb0e   : > { %2670 = vmatmul.msk.f32.vlgmr.msrb.gmra.mxu3 %vm1179_vm3, %v3480_v8 }
 0xb19   : > { %v2056_v11 = vpop.permute.xlu1 %2055  ;;  %v2054_v38 = vpop.permute.xlu0 %2053 }
 0xb1a   : > { %2109 = vrot.lane.b32.xlu1 %v2054_v38, %s3651_s28  ;;  %2135 = vrot.lane.b32.xlu2 %v2056_v11, %s3651_s28  ;;  %v2797_v49 = vpack.i.bf16 %v2056_v11, %v2054_v38  ;;  %s3654_s28 = smov 8  }
 0xb74   : > { %v2136_v40 = vpop.permute.xlu2 %2135 }
 0xb75   : > { %v2084_v35 = vpop.permute.xlu0 %2083  ;;  %2675 = vmatpush.xpose.msk.msra.mxu0 %vm1179_vm3, %v2136_v40 }
 0xb76   : > { %2671 = vmatpush.xpose.msk.msra.mxu2 %vm1179_vm3, %v2084_v35 }
 0xb78   : > { %2676 = vmatmul.msk.f32.vlgmr.msra.gmra.mxu0 %vm1179_vm3, %v2056_v11 }
 0xb79   : > { %2672 = vmatmul.msk.f32.vlgmr.msra.gmra.mxu2 %vm1179_vm3, %v2052_v9 }
 0xb8c   : > { %v2110_v12 = vpop.permute.xlu1 %2109 }
 0xb8d   : > { %2673 = vmatpush.xpose.msk.msra.mxu3 %vm1179_vm3, %v2110_v12 }
 0xb90   : > { %2674 = vmatmul.msk.f32.vlgmr.msra.gmra.mxu3 %vm1179_vm3, %v2054_v38 }
 0xb91   : > { %v2080_v19 = vpop.f32.mrf.mxu3 }
 0xb92   : > { %v2161_v20 = vmul.f32 0.35355338, %v2080_v19 }
 0xb94   : > { %v2165_v21 = vsel %vm1179_vm3, %v2161_v20, -inf }
 0xbf5   : > { %v2158_v13 = vpop.f32.mrf.mxu0 }
 0xbf6   : > { %v2164_v14 = vmul.f32 0.35355338, %v2158_v13 }
 0xbf8   : > { %v2174_v15 = vsel %vm1179_vm3, %v2164_v14, -inf }
 0xbf9   : > { %2175 = vmax.xlane.f32.xlu2 %v2174_v15 }
 0xbfc   : > { %v2106_v16 = vpop.f32.mrf.mxu2 }
 0xbfd   : > { %v2162_v17 = vmul.f32 0.35355338, %v2106_v16 }
 0xbff   : > { %v2168_v18 = vsel %vm1179_vm3, %v2162_v17, -inf }
 0xc00   : > { %2169 = vmax.xlane.f32.xlu0 %v2168_v18 }
 0xc08   : > { %2166 = vmax.xlane.f32.xlu0 %v2165_v21 }
 0xc13   : > { %v2132_v22 = vpop.f32.mrf.mxu3 }
 0xc14   : > { %v2163_v23 = vmul.f32 0.35355338, %v2132_v22 }
 0xc16   : > { %v2171_v24 = vsel %vm1179_vm3, %v2163_v23, -inf }
 0xc17   : > { %2172 = vmax.xlane.f32.xlu1 %v2171_v24 }
 0xc6c   : > { %v2176_v25 = vpop.xlane.xlu2 %2175 }
 0xc6d   : > { %v2180_v26 = vsub.f32 %v2164_v14, %v2176_v25 }
 0xc6f   : > { %v2187_v27 = vmul.f32 1.442695, %v2180_v26 }
 0xc71   : > { %2869 = vpow2.f32 %v2187_v27 }
 0xc73   : > { %v2170_v28 = vpop.xlane.xlu0 %2169 }
 0xc74   : > { %v2178_v29 = vsub.f32 %v2162_v17, %v2170_v28 }
 0xc76   : > { %v2183_v30 = vmul.f32 1.442695, %v2178_v29 }
 0xc77   : > { %v2870_v31 = vpop.eup %2869 }
 0xc78   : > { %2871 = vpow2.f32 %v2183_v30  ;;  %v2198_v33 = vsel %vm1179_vm3, %v2870_v31, 0.0 }
 0xc79   : > { %2199 = vadd.xlane.f32.xlu0 %v2198_v33 }
 0xc7b   : > { %v2167_v34 = vpop.xlane.xlu0 %2166 }
 0xc7c   : > { %v2177_v36 = vsub.f32 %v2161_v20, %v2167_v34 }
 0xc7e   : > { %v2872_v37 = vpop.eup %2871  ;;  %v2181_v39 = vmul.f32 1.442695, %v2177_v36 }
 0xc7f   : > { %v2192_v41 = vsel %vm1179_vm3, %v2872_v37, 0.0 }
 0xc80   : > { %2873 = vpow2.f32 %v2181_v39  ;;  %2193 = vadd.xlane.f32.xlu1 %v2192_v41 }
 0xc86   : > { %v2874_v42 = vpop.eup %2873 }
 0xc87   : > { %v2189_v43 = vsel %vm1179_vm3, %v2874_v42, 0.0 }
 0xc88   : > { %2190 = vadd.xlane.f32.xlu0 %v2189_v43 }
 0xc8a   : > { %v2173_v44 = vpop.xlane.xlu1 %2172 }
 0xc8b   : > { %v2179_v45 = vsub.f32 %v2163_v23, %v2173_v44 }
 0xc8d   : > { %v2185_v46 = vmul.f32 1.442695, %v2179_v45 }
 0xc8f   : > { %2875 = vpow2.f32 %v2185_v46 }
 0xc95   : > { %v2876_v47 = vpop.eup %2875 }
 0xc96   : > { %v2195_v48 = vsel %vm1179_vm3, %v2876_v47, 0.0 }
 0xc97   : > { %2196 = vadd.xlane.f32.xlu2 %v2195_v48 }
 0xc99   : > { %2235 = vrot.lane.b32.xlu1 %v2052_v9, %s3652_s2  ;;  %v1095_v9 = vld [vmem:[%s3653_s11 + $0x8] sm:$0xff] }
 0xc9c   : > { %2209 = vrot.lane.b32.xlu0 %v3480_v8, %s3652_s2  ;;  %v1096_v8 = vld [vmem:[%s3653_s11 + $0x10] sm:$0xff] }
 0xcaf   : > { %2798 = vrot.lane.b32.xlu2 %v2797_v49, %s3652_s2  ;;  %s3657_s2 = sld [smem:[#allocation15_spill]] }
 0xcb5   : > { %v2814_v15 = vld [vmem:[%s3657_s2] ss:$0 sm:$0xff]  ;;  %s3661_s2 = sld [smem:[#allocation17_spill]] }
 0xcbb   : > { %v2816_v49 = vld [vmem:[%s3661_s2] ss:$0 sm:$0xff] }
 0xcec   : > { %v2200_v50 = vpop.xlane.xlu0 %2199 }
 0xcf3   : > { %v2194_v51 = vpop.xlane.xlu1 %2193 }
 0xcf4   : > { %2877 = vrcp.f32 %v2194_v51 }
 0xcfa   : > { %v2878_v53 = vpop.eup %2877 }
 0xcfb   : > { %v2191_v52 = vpop.xlane.xlu0 %2190  ;;  %v2206_v56 = vmul.f32 %v2878_v53, %v2872_v37 }
 0xcfc   : > { %2879 = vrcp.f32 %v2191_v52 }
 0xcfd   : > { %2881 = vrcp.f32 %v2200_v50 }
 0xd02   : > { %v2880_v55 = vpop.eup %2879 }
 0xd03   : > { %v2205_v58 = vmul.f32 %v2880_v55, %v2874_v42  ;;  %v2882_v60 = vpop.eup %2881  ;;  %v2817_v55 = vld [vmem:[%s3662_s1] ss:$0 sm:$0xff]  ;;  %s3665_s1 = sld [smem:[#allocation23_spill]] }
 0xd04   : > { %v2208_v1 = vmul.f32 %v2882_v60, %v2870_v31 }
 0xd0a   : > { %v2197_v54 = vpop.xlane.xlu2 %2196 }
 0xd0b   : > { %v2236_v57 = vpop.permute.xlu1 %2235  ;;  %2883 = vrcp.f32 %v2197_v54 }
 0xd0c   : > { %2256 = vmatpush.msrb.mxu3 %v2236_v57 }
 0xd0d   : > { %2678 = vmatmul.msk.f32.vlgmr.msrb.gmra.mxu3 %vm1179_vm3, %v2206_v56 }
 0xd0e   : > { %v2210_v59 = vpop.permute.xlu0 %2209 }
 0xd0f   : > { %2230 = vmatpush.msrb.mxu2 %v2210_v59  ;;  %v2818_v59 = vld [vmem:[%s3663_s3] ss:$0 sm:$0xff]  ;;  %s1048_s3 = sand.u32 1, %s2945_s16  }
 0xd10   : > { %2677 = vmatmul.msk.f32.vlgmr.msrb.gmra.mxu2 %vm1179_vm3, %v2205_v58  ;;  %s2625_s2 = sshll.u32 %s1048_s3, 3 }
 0xd11   : > { %v2884_v61 = vpop.eup %2883  ;;  %2346 = vmatpush.msra.mxu2 %v1097_v7  ;;  %s1050_s5 = scalar_lea.vmem [#allocation2], %s2625_s2 }
 0xd12   : > { %v2799_v62 = vpop.permute.xlu2 %2798  ;;  %v2207_v2 = vmul.f32 %v2884_v61, %v2876_v47  ;;  %s2513_s6 = sshll.u32 %s1050_s5, 4  ;;  %s2514_s6 = int_to_ptr.vmem [resolvable:$true] %s2513_s6 }
 0xd13   : > { %v2801_v63 = vunpack.i.h.bf16 %v2799_v62  ;;  %v2800_v0 = vunpack.i.l.bf16 %v2799_v62  ;;  %2347 = vmatpush.msra.mxu2 %v1096_v8 }
 0xd15   : > { %2282 = vmatpush.msrb.mxu0 %v2800_v0  ;;  %2308 = vmatpush.msrb.mxu1 %v2801_v63 }
 0xd16   : > { %2679 = vmatmul.msk.f32.vlgmr.msrb.gmra.mxu0 %vm1179_vm3, %v2207_v2  ;;  %2680 = vmatmul.msk.f32.vlgmr.msrb.gmra.mxu1 %vm1179_vm3, %v2208_v1 }
 0xd17   : > { %2348 = vmatpush.msra.mxu2 %v1095_v9 }
 0xd19   : > { %2349 = vmatpush.msra.mxu2 %v1094_v10 }
 0xd90   : > { %v2258_v3 = vpop.f32.mrf.mxu3 }
 0xd91   : > { %2314 = vrot.lane.b32.xlu1 %v2258_v3, %s3654_s28  ;;  %s3658_s28 = sld [smem:[#allocation18_spill]] }
 0xd93   : > { %v2284_v4 = vpop.f32.mrf.mxu0  ;;  %v2310_v6 = vpop.f32.mrf.mxu1 }
 0xd94   : > { %2318 = vrot.lane.b32.xlu2 %v2284_v4, %s3655_s26  ;;  %v2232_v38 = vpop.f32.mrf.mxu2  ;;  %s3659_s26 = sld [smem:[#allocation20_spill]] }
 0xd97   : > { %v1104_v25 = vld [vmem:[%s3658_s28 + $0x18] sm:$0xff]  ;;  %v1103_v26 = vld [vmem:[%s3658_s28 + $0x10] sm:$0xff]  ;;  %v1101_v27 = vld [vmem:[%s3658_s28] sm:$0xff] }
 0xd98   : > { %2403 = vmatpush.msra.mxu3 %v1104_v25 }
 0xd99   : > { %2322 = vrot.lane.b32.xlu1 %v2310_v6, %s3656_s18  ;;  %s3660_s18 = sld [smem:[#allocation16_spill]] }
 0xd9a   : > { %2404 = vmatpush.msra.mxu3 %v1103_v26  ;;  %v1113_v28 = vld [vmem:[%s3659_s26 + $0x38] sm:$0xff]  ;;  %v1112_v29 = vld [vmem:[%s3659_s26 + $0x30] sm:$0xff]  ;;  %v1111_v30 = vld [vmem:[%s3659_s26 + $0x28] sm:$0xff] }
 0xd9b   : > { %2426 = vmatpush.msra.mxu0 %v1113_v28  ;;  %v1110_v34 = vld [vmem:[%s3659_s26 + $0x20] sm:$0xff]  ;;  %v1109_v37 = vld [vmem:[%s3659_s26 + $0x18] sm:$0xff]  ;;  %v1108_v52 = vld [vmem:[%s3659_s26 + $0x10] sm:$0xff] }
 0xd9c   : > { %v1107_v53 = vld [vmem:[%s3659_s26 + $0x8] sm:$0xff]  ;;  %v1106_v54 = vld [vmem:[%s3659_s26] sm:$0xff] }
 0xd9d   : > { %2427 = vmatpush.msra.mxu0 %v1112_v29 }
 0xd9f   : > { %2428 = vmatpush.msra.mxu0 %v1111_v30  ;;  %v2815_v46 = vld [vmem:[%s3660_s18] ss:$0 sm:$0xff]  ;;  %s3664_s18 = sld [smem:[#allocation22_spill]] }
 0xda1   : > { %2429 = vmatpush.msra.mxu0 %v1110_v34 }
 0xda3   : > { %2430 = vmatpush.msra.mxu0 %v1109_v37 }
 0xda5   : > { %2431 = vmatpush.msra.mxu0 %v1108_v52 }
 0xda7   : > { %2432 = vmatpush.msra.mxu0 %v1107_v53 }
 0xda9   : > { %2433 = vmatpush.msra.mxu0 %v1106_v54 }
 0xdee   : > { %v2319_v35 = vpop.permute.xlu2 %2318 }
 0xe03   : > { %v2315_v11 = vpop.permute.xlu1 %2314 }
 0xe04   : > { %v2325_v40 = vsel %vm1179_vm3, %v2232_v38, %v2315_v11 }
 0xe05   : > { %v2326_v13 = vsel %vm1189_vm5, %v2325_v40, %v2319_v35 }
 0xe0b   : > { %v2323_v12 = vpop.permute.xlu1 %2322 }
 0xe0c   : > { %v2327_v14 = vsel %vm1670_vm7, %v2326_v13, %v2323_v12  ;;  %v2819_v12 = vld [vmem:[%s3664_s18] ss:$0 sm:$0xff]  ;;  %s2685_s18 = sshll.u32 %s3202_s0, 3  ;;  %s2501_s0 = scalar_lea.sflag [#allocation3], %s1048_s3 }
 0xe0d   : > { %2681 = vmatmul.msk.f32.vlgmr.msra.gmra.mxu2 %vm1222_vm6, %v2327_v14 }
 0xe90   : > { %v2351_v16 = vpop.f32.mrf.mxu2 }
 0xe91   : > { %v2352_v17 = vadd.f32 %v2814_v15, %v2351_v16  ;;  %v2820_v15 = vld [vmem:[%s3665_s1] ss:$0 sm:$0xff]  ;;  %s2511_s1 = scalar_lea.hbm %s3179_s12, %s2685_s18  ;;  %s2911_s18 = scalar_lea.hbm %s3179_s12, 16 }
 0xe92   : > { %s2515_s8 = sshll.u32 %s2511_s1, 4  ;;  %s2516_s8 = int_to_ptr.hbm [resolvable:$true] %s2515_s8 }
 0xe93   : > { %v2354_v18 = vadd.f32 %v2352_v17, %v3475_v5  ;;  %v1102_v5 = vld [vmem:[%s3658_s28 + $0x8] sm:$0xff]  ;;  %s2905_s9 = sshra.s32 %s2516_s8, 4  ;;  %s2906_s9 = int_to_ptr.hbm [resolvable:$true] %s2905_s9 }
 0xe94   : > { %2405 = vmatpush.msra.mxu3 %v1102_v5  ;;  %s2907_s11 = scalar_lea.hbm %s2906_s9, 8  ;;  %p2912_p0 = scmp.lt.s32.totalorder %s2906_s9, %s3179_s12 }
 0xe95   : > { %v2355_v19 = vsel %vm1222_vm6, %v2354_v18, 0.0  ;;  %p2908_p11 = scmp.ne.s32.totalorder %s2906_s9, %s2907_s11  ;;  %p2913_p1 = scmp.lt.s32.totalorder %s2911_s18, %s2907_s11 }
 0xe96   : > { %2356 = vadd.xlane.f32.xlu0 %v2355_v19  ;;  %2406 = vmatpush.msra.mxu3 %v1101_v27 }
 0xe97   : > { %p2909_p12 = pnand %p2908_p11, %p3219_p5  ;;  %p2914_p2 = por %p2913_p1, %p2912_p0 }
 0xe99   : > { %p2910_p13 = pneg %p2909_p12 }
 0xe9b   : > { %p2915_p3 = pnand %p2914_p2, %p2910_p13 }
 0xf09   : > { %v2357_v20 = vpop.xlane.xlu0 %2356 }
 0xf0a   : > { %v2358_v21 = vmul.f32 %v2357_v20, %v3402_v32 }
 0xf0c   : > { %v2359_v22 = vsub.f32 %v2354_v18, %v2358_v21 }
 0xf0e   : > { %v2360_v23 = vmul.f32 %v2359_v22, %v2359_v22 }
 0xf10   : > { %v2361_v24 = vsel %vm1222_vm6, %v2360_v23, 0.0 }
 0xf11   : > { %2362 = vadd.xlane.f32.xlu2 %v2361_v24 }
 0xf84   : > { %v2363_v31 = vpop.xlane.xlu2 %2362 }
 0xf85   : > { %v2364_v33 = vmul.f32 %v2363_v31, %v3402_v32 }
 0xf87   : > { %v2365_v36 = vadd.f32 1e-05, %v2364_v33  ;;  %v2821_v33 = vld [vmem:[%s3169_s27] ss:$0 sm:$0xff] }
 0xf89   : > { %2885 = vrsqrt.f32 %v2365_v36  ;;  %vm2372_vm1 = vweird.f32 %v2365_v36 }
 0xf8f   : > { %v2886_v39 = vpop.eup %2885 }
 0xf90   : > { %v2367_v41 = vmul.f32 %v2886_v39, %v2365_v36  ;;  %vm2373_vm0 = vweird.f32 %v2886_v39  ;;  %v2822_v36 = vld [vmem:[%s3174_s4] ss:$0 sm:$0xff] }
 0xf91   : > { %vm2374_vm3 = vmor %vm2372_vm1, %vm2373_vm0 }
 0xf92   : > { %v2368_v42 = vmul.f32 %v2886_v39, %v2367_v41 }
 0xf94   : > { %v2369_v43 = vmul.f32 0.5, %v2368_v42 }
 0xf96   : > { %v2370_v44 = vsub.f32 1.5, %v2369_v43 }
 0xf98   : > { %v2371_v45 = vmul.f32 %v2886_v39, %v2370_v44 }
 0xf9a   : > { %v2375_v47 = vsel %vm2374_vm3, %v2886_v39, %v2371_v45 }
 0xf9b   : > { %v2376_v48 = vmul.f32 %v2375_v47, %v2359_v22 }
 0xf9d   : > { %v2380_v50 = vmul.f32 %v2815_v46, %v2376_v48 }
 0xf9f   : > { %v2384_v51 = vadd.f32 %v2816_v49, %v2380_v50 }
 0xfa1   : > { %2682 = vmatmul.msk.f32.vlgmr.msra.gmra.mxu3 %vm1222_vm6, %v2384_v51 }
0x1024   : > { %v2408_v56 = vpop.f32.mrf.mxu3 }
0x1025   : > { %v2409_v57 = vadd.f32 %v2817_v55, %v2408_v56 }
0x1027   : > { %v2411_v58 = vmax.f32 %v2409_v57, 0.0 }
0x1029   : > { %2683 = vmatmul.msk.f32.vlgmr.msra.gmra.mxu0 %vm1805_vm15, %v2411_v58 }
0x10a6   : > { %v2435_v60 = vpop.f32.mrf.mxu0 }
0x10a7   : > { %v2436_v61 = vadd.f32 %v2818_v59, %v2435_v60 }
0x10a9   : > { %v2438_v62 = vadd.f32 %v2436_v61, %v2384_v51 }
0x10ab   : > { %v2439_v63 = vsel %vm1222_vm6, %v2438_v62, 0.0 }
0x10ac   : > { %2440 = vadd.xlane.f32.xlu1 %v2439_v63 }
0x111f   : > { %v2441_v0 = vpop.xlane.xlu1 %2440 }
0x1120   : > { %v2442_v1 = vmul.f32 %v2441_v0, %v3402_v32 }
0x1122   : > { %v2443_v2 = vsub.f32 %v2438_v62, %v2442_v1 }
0x1124   : > { %v2444_v3 = vmul.f32 %v2443_v2, %v2443_v2 }
0x1126   : > { %v2445_v4 = vsel %vm1222_vm6, %v2444_v3, 0.0 }
0x1127   : > { %2446 = vadd.xlane.f32.xlu0 %v2445_v4 }
0x119a   : > { %v2447_v6 = vpop.xlane.xlu0 %2446 }
0x119b   : > { %v2448_v7 = vmul.f32 %v2447_v6, %v3402_v32 }
0x119d   : > { %v2449_v8 = vadd.f32 1e-05, %v2448_v7 }
0x119f   : > { %2887 = vrsqrt.f32 %v2449_v8  ;;  %vm2456_vm7 = vweird.f32 %v2449_v8 }
0x11a5   : > { %v2888_v9 = vpop.eup %2887 }
0x11a6   : > { %v2451_v10 = vmul.f32 %v2888_v9, %v2449_v8  ;;  %vm2457_vm5 = vweird.f32 %v2888_v9 }
0x11a7   : > { %vm2458_vm15 = vmor %vm2456_vm7, %vm2457_vm5 }
0x11a8   : > { %v2452_v11 = vmul.f32 %v2888_v9, %v2451_v10 }
0x11aa   : > { %v2453_v38 = vmul.f32 0.5, %v2452_v11 }
0x11ac   : > { %v2454_v40 = vsub.f32 1.5, %v2453_v38 }
0x11ae   : > { %v2455_v35 = vmul.f32 %v2888_v9, %v2454_v40 }
0x11b0   : > { %v2459_v13 = vsel %vm2458_vm15, %v2888_v9, %v2455_v35 }
0x11b1   : > { %v2460_v14 = vmul.f32 %v2459_v13, %v2443_v2 }
0x11b3   : > { %v2464_v16 = vmul.f32 %v2819_v12, %v2460_v14 }
0x11b5   : > { %v2468_v17 = vadd.f32 %v2820_v15, %v2464_v16 }
0x11b7   : > { %v2469_v18 = vsel %vm1222_vm6, %v2468_v17, 0.0 }
0x11b8   : > { %2470 = vadd.xlane.f32.xlu2 %v2469_v18 }
0x122b   : > { %v2471_v19 = vpop.xlane.xlu2 %2470 }
0x122c   : > { %v2472_v20 = vmul.f32 %v2471_v19, %v3402_v32 }
0x122e   : > { %v2473_v21 = vsub.f32 %v2468_v17, %v2472_v20 }
0x1230   : > { %v2474_v22 = vmul.f32 %v2473_v21, %v2473_v21 }
0x1232   : > { %v2475_v23 = vsel %vm1222_vm6, %v2474_v22, 0.0 }
0x1233   : > { %2476 = vadd.xlane.f32.xlu1 %v2475_v23 }
0x12a6   : > { %v2477_v24 = vpop.xlane.xlu1 %2476 }
0x12a7   : > { %v2478_v25 = vmul.f32 %v2477_v24, %v3402_v32 }
0x12a9   : > { %v2479_v26 = vadd.f32 1e-05, %v2478_v25 }
0x12ab   : > { %2889 = vrsqrt.f32 %v2479_v26  ;;  %vm2486_vm12 = vweird.f32 %v2479_v26 }
0x12b1   : > { %v2890_v5 = vpop.eup %2889 }
0x12b2   : > { %v2481_v27 = vmul.f32 %v2890_v5, %v2479_v26  ;;  %vm2487_vm11 = vweird.f32 %v2890_v5 }
0x12b3   : > { %vm2488_vm13 = vmor %vm2486_vm12, %vm2487_vm11 }
0x12b4   : > { %v2482_v28 = vmul.f32 %v2890_v5, %v2481_v27 }
0x12b6   : > { %v2483_v29 = vmul.f32 0.5, %v2482_v28 }
0x12b8   : > { %v2484_v30 = vsub.f32 1.5, %v2483_v29 }
0x12ba   : > { %v2485_v31 = vmul.f32 %v2890_v5, %v2484_v30 }
0x12bc   : > { %v2489_v34 = vsel %vm2488_vm13, %v2890_v5, %v2485_v31 }
0x12bd   : > { %v2490_v32 = vmul.f32 %v2489_v34, %v2473_v21 }
0x12bf   : > { %v2494_v37 = vmul.f32 %v2821_v33, %v2490_v32 }
0x12c1   : > { %v2498_v39 = vadd.f32 %v2822_v36, %v2494_v37 }
0x12c3   : > { %2499 = vst.msk [vmem:[%s1050_s5] sm:$0xff] %vm1222_vm6, %v2498_v39 }
0x12c4   : > { %2918 = shalt.err (!%p2915_p3)
}
0x12c5   : > { %2692 = dma.vmem_to_hbm [thread:$0]  (%p3219_p5), %s2514_s6, 128, %s2516_s8, %s2501_s0  }
0x12c6 PF: > { %p2698_p4 = scmp.ge.s32.totalorder %s2953_s22, 2  ;;  %s2527_s5 = sand.u32 1, %s2941_s15  }
0x12c7   : > { %s2528_s3 = scalar_lea.sflag [#allocation3], %s2527_s5 }
0x12c8   : > { %p2695_p7 = pnand %p2698_p4, %p3223_p6 }
0x12ca   : > { %p2696_p8 = pneg %p2695_p7 }
0x12cc   : > { %2936 = dma.done.wait (%p2696_p8), %s2528_s3, 128  }
0x12cd   : > { %2938 = vsyncadd (%p2696_p8), %s2528_s3, 4294967168  ;;  %s3666_s22 = sld [smem:[#allocation28_spill]]  ;;  %s3669_s15 = smov %s2945_s16 }
0x12ce   : > { %s3667_s9 = sld [smem:[#allocation27_spill]] }
0x12cf   : > { %s3668_s18 = sld [smem:[#allocation29_spill]] }
0x12d3   : > { %p79_p9 = scmp.ge.s32.totalorder %s3666_s22, 4  }
0x12d4   : > { %s3670_s16 = smov %s3667_s9 }
0x12d5   :  { %81 = sbr.rel (!%p79_p9) target bundleno = 70 (0x46), region = 228 }
0x12da   :  { %2534 = vsyncpa [#allocation3], 1 }
0x12db   :  { %2536 = vsyncpa [#allocation3 + $0x1], 1 }

</bundles_post_ra>
